<compile_context>
chip_gen: v6e
topology: v6e:2x2x1
jax: 0.10.0
libtpu: 0.0.40
codegen_flags: <defaults>
</compile_context>

<pallas_src>
import functools
import math

import jax
import jax.numpy as jnp
from jax.experimental import pallas as pl
from jax.experimental.pallas import tpu as pltpu

EPS = 1e-6                       # RMSNorm variance_epsilon
VMEM_LIMIT = 40 * 1024 * 1024    # leaves headroom even on v7x's 64 MiB per-TC VMEM
NEG_INF = -1e30                  # additive mask value (avoids inf-inf NaNs)


def _pick_tile(dim, pref):
    """Largest power-of-two-ish tile <= pref dividing dim (falls back to full)."""
    t = min(pref, dim)
    while t >= 8:
        if dim % t == 0:
            return t
        t //= 2
    # TODO(synk): pad non-divisible dims instead of a full-extent fallback.
    return dim


def _pick_row_tile(m, pref):
    """Row tile; additionally keep >=2 programs on the parallel row axis
    (v7x megacore) when the row count allows it."""
    tm = _pick_tile(m, pref)
    while m // tm < 2 and tm > 8 and tm % 2 == 0 and m % (tm // 2) == 0:
        tm //= 2
    return tm


# --------------------------- Pallas kernel bodies ---------------------------

def _ln_qkv_kernel(x_ref, g_ref, w_ref, o_ref, xn_ref, *, eps):
    """RMSNorm(x_tile) @ w_tile; the norm is computed once per row tile (j==0)."""
    @pl.when(pl.program_id(1) == 0)
    def _():
        x = x_ref[...].astype(jnp.float32)                   # (tm, H) full H row
        var = jnp.mean(x * x, axis=-1, keepdims=True)
        xn = x * jax.lax.rsqrt(var + eps) * g_ref[...].astype(jnp.float32)
        xn_ref[...] = xn.astype(xn_ref.dtype)                # matmul input dtype

    o_ref[...] = jnp.dot(xn_ref[...], w_ref[...],
                         preferred_element_type=jnp.float32).astype(o_ref.dtype)


def _matmul_res_kernel(x_ref, w_ref, r_ref, o_ref, acc_ref):
    """Tiled matmul with fp32 accumulator; residual added in the epilogue."""
    @pl.when(pl.program_id(2) == 0)
    def _():
        acc_ref[...] = jnp.zeros(acc_ref.shape, acc_ref.dtype)

    acc_ref[...] += jnp.dot(x_ref[...], w_ref[...],
                            preferred_element_type=jnp.float32)

    @pl.when(pl.program_id(2) == pl.num_programs(2) - 1)
    def _():
        o_ref[...] = (acc_ref[...] + r_ref[...].astype(jnp.float32)).astype(o_ref.dtype)


def _flash_attn_kernel(q_ref, k_ref, v_ref, cq_ref, sq_ref, ck_ref, sk_ref,
                       o_ref, q_sc, m_sc, l_sc, acc_sc, *, scale, causal):
    """Online-softmax flash attention over kv tiles.

    q_ref:  (tq, groups*D)  -- all query heads of one kv group (GQA KV reuse)
    k_ref:  (tkv, D), v_ref: (tkv, D)
    RoPE applied in-kernel; causal mask generated from iota; MXU operands stay
    in the model dtype (fp32 accumulation via preferred_element_type).
    """
    qi = pl.program_id(1)
    ki = pl.program_id(2)
    tq = q_ref.shape[0]
    tkv, D = k_ref.shape
    groups = q_ref.shape[1] // D

    def rope(x, cos, sin):
        # rotate_half via XLU roll (free slot) + sign pattern, in fp32.
        lane = jax.lax.broadcasted_iota(jnp.int32, (1, D), 1)
        sign = jnp.where(lane < D // 2, -1.0, 1.0).astype(jnp.float32)
        rot = pltpu.roll(x, shift=D // 2, axis=1) * sign
        return x * cos + rot * sin

    @pl.when(ki == 0)
    def _():
        cos = cq_ref[...].astype(jnp.float32)                # (tq, D) small tile
        sin = sq_ref[...].astype(jnp.float32)
        for g in range(groups):
            qg = q_ref[:, g * D:(g + 1) * D].astype(jnp.float32)
            # fold 1/sqrt(D) into q once per q tile; store in model dtype
            q_sc[:, g * D:(g + 1) * D] = (rope(qg, cos, sin) * scale).astype(q_sc.dtype)
        m_sc[...] = jnp.full(m_sc.shape, -jnp.inf, m_sc.dtype)
        l_sc[...] = jnp.zeros(l_sc.shape, l_sc.dtype)
        acc_sc[...] = jnp.zeros(acc_sc.shape, acc_sc.dtype)

    def compute():
        cos = ck_ref[...].astype(jnp.float32)                # (tkv, D)
        sin = sk_ref[...].astype(jnp.float32)
        k = rope(k_ref[...].astype(jnp.float32), cos, sin).astype(k_ref.dtype)
        v = v_ref[...]
        if causal:
            qpos = qi * tq + jax.lax.broadcasted_iota(jnp.int32, (tq, tkv), 0)
            kpos = ki * tkv + jax.lax.broadcasted_iota(jnp.int32, (tq, tkv), 1)
            keep = qpos >= kpos
        for g in range(groups):
            qg = q_sc[:, g * D:(g + 1) * D]                  # model dtype, pre-scaled
            s = jax.lax.dot_general(qg, k, (((1,), (1,)), ((), ())),
                                    preferred_element_type=jnp.float32)
            if causal:
                s = jnp.where(keep, s, NEG_INF)
            m_prev = m_sc[g]
            m_new = jnp.maximum(m_prev, jnp.max(s, axis=-1, keepdims=True))
            alpha = jnp.exp(m_prev - m_new)
            p = jnp.exp(s - m_new)
            l_sc[g] = alpha * l_sc[g] + jnp.sum(p, axis=-1, keepdims=True)
            acc_sc[g] = alpha * acc_sc[g] + jnp.dot(p.astype(v.dtype), v,
                                                    preferred_element_type=jnp.float32)
            m_sc[g] = m_new

    if causal:
        # skip kv tiles entirely in the masked-out future of this q tile
        pl.when(ki * tkv <= (qi + 1) * tq - 1)(compute)
    else:
        compute()

    @pl.when(ki == pl.num_programs(2) - 1)
    def _():
        outs = []
        for g in range(groups):
            l = l_sc[g]
            inv = pl.reciprocal(l, approx=True)              # EUP slot
            inv = inv * (2.0 - l * inv)                      # 1 Newton step -> full fp32
            outs.append(acc_sc[g] * inv)
        o_ref[...] = jnp.concatenate(outs, axis=-1).astype(o_ref.dtype)


def _mlp_kernel(x_ref, g_ref, wg_ref, wu_ref, wd_ref, o_ref, xn_ref, acc_ref, *, eps):
    """ln2 -> gate/up -> SiLU(gate)*up -> down, tiled over I, + residual (from x)."""
    j = pl.program_id(1)

    @pl.when(j == 0)
    def _():
        x = x_ref[...].astype(jnp.float32)                   # (tm, H) full H row
        var = jnp.mean(x * x, axis=-1, keepdims=True)
        xn = x * jax.lax.rsqrt(var + eps) * g_ref[...].astype(jnp.float32)
        xn_ref[...] = xn.astype(xn_ref.dtype)                # matmul input dtype
        acc_ref[...] = jnp.zeros(acc_ref.shape, acc_ref.dtype)

    xn = xn_ref[...]
    g = jnp.dot(xn, wg_ref[...], preferred_element_type=jnp.float32)
    u = jnp.dot(xn, wu_ref[...], preferred_element_type=jnp.float32)
    h = (g * jax.nn.sigmoid(g)) * u                          # QuantSwiglu no-quant path
    acc_ref[...] += jnp.dot(h.astype(wd_ref.dtype), wd_ref[...],
                            preferred_element_type=jnp.float32)

    @pl.when(j == pl.num_programs(1) - 1)
    def _():
        o_ref[...] = (acc_ref[...] + x_ref[...].astype(jnp.float32)).astype(o_ref.dtype)


# ------------------------------ kernel wrappers ------------------------------

def ln_qkv(x2d, ln_w, w_t, *, tm_pref=256, tn_pref=256):
    """RMSNorm(x) @ w_t.  x2d: (M, H); w_t: (H, Nqkv) pre-transposed, fused QKV."""
    M, H = x2d.shape
    N = w_t.shape[1]
    tm, tn = _pick_row_tile(M, tm_pref), _pick_tile(N, tn_pref)
    return pl.pallas_call(
        functools.partial(_ln_qkv_kernel, eps=EPS),
        out_shape=jax.ShapeDtypeStruct((M, N), x2d.dtype),
        grid=(M // tm, N // tn),
        in_specs=[pl.BlockSpec((tm, H), lambda i, j: (i, 0)),
                  pl.BlockSpec((1, H), lambda i, j: (0, 0)),
                  pl.BlockSpec((H, tn), lambda i, j: (0, j))],
        out_specs=pl.BlockSpec((tm, tn), lambda i, j: (i, j)),
        scratch_shapes=[pltpu.VMEM((tm, H), x2d.dtype)],
        compiler_params=pltpu.CompilerParams(
            dimension_semantics=("parallel", "arbitrary"),
            vmem_limit_bytes=VMEM_LIMIT),
    )(x2d, ln_w.reshape(1, H), w_t)


def matmul_residual(x2d, w_t, r2d, *, tm_pref=256, tn_pref=256, tk_pref=256):
    """(x2d @ w_t) + r2d, tiled over (M, N, K) with fp32 accumulation."""
    M, K = x2d.shape
    N = w_t.shape[1]
    tm = _pick_row_tile(M, tm_pref)
    tn, tk = _pick_tile(N, tn_pref), _pick_tile(K, tk_pref)
    return pl.pallas_call(
        _matmul_res_kernel,
        out_shape=jax.ShapeDtypeStruct((M, N), x2d.dtype),
        grid=(M // tm, N // tn, K // tk),
        in_specs=[pl.BlockSpec((tm, tk), lambda i, j, k: (i, k)),
                  pl.BlockSpec((tk, tn), lambda i, j, k: (k, j)),
                  pl.BlockSpec((tm, tn), lambda i, j, k: (i, j))],
        out_specs=pl.BlockSpec((tm, tn), lambda i, j, k: (i, j)),
        scratch_shapes=[pltpu.VMEM((tm, tn), jnp.float32)],
        compiler_params=pltpu.CompilerParams(
            dimension_semantics=("parallel", "parallel", "arbitrary"),
            vmem_limit_bytes=VMEM_LIMIT),
    )(x2d, w_t, r2d)


def flash_attention(qkv3, cos, sin, num_heads, num_kv_heads, scale, *,
                    causal=True, tq_pref=128, tkv_pref=256):
    """Flash attention reading q/k/v straight out of the fused QKV buffer.

    qkv3: (B, S, (Hq + 2*Hkv) * D) -- [q heads | k heads | v heads] per row.
    Returns (B, S, Hq * D) in (head-major, D) column order.
    """
    B, S, _ = qkv3.shape
    D = cos.shape[-1]
    Hq, Hkv = num_heads, num_kv_heads
    groups = Hq // Hkv
    Skv = S
    H = Hq * D
    tq, tkv = _pick_tile(S, tq_pref), _pick_tile(Skv, tkv_pref)

    return pl.pallas_call(
        functools.partial(_flash_attn_kernel, scale=scale, causal=causal),
        out_shape=jax.ShapeDtypeStruct((B, S, H), qkv3.dtype),
        grid=(B * Hkv, S // tq, Skv // tkv),
        in_specs=[
            # q: all `groups` query heads of kv-group kvh     (block = groups*D cols)
            pl.BlockSpec((None, tq, groups * D),
                         lambda bh, qi, ki: (bh // Hkv, qi, bh % Hkv)),
            # k: kv head kvh (column D-blocks start after the q region)
            pl.BlockSpec((None, tkv, D),
                         lambda bh, qi, ki: (bh // Hkv, ki, Hq + bh % Hkv)),
            # v: kv head kvh (after q and k regions)
            pl.BlockSpec((None, tkv, D),
                         lambda bh, qi, ki: (bh // Hkv, ki, Hq + Hkv + bh % Hkv)),
            # rope tables (tiny tiles)
            pl.BlockSpec((tq, D), lambda bh, qi, ki: (qi, 0)),
            pl.BlockSpec((tq, D), lambda bh, qi, ki: (qi, 0)),
            pl.BlockSpec((tkv, D), lambda bh, qi, ki: (ki, 0)),
            pl.BlockSpec((tkv, D), lambda bh, qi, ki: (ki, 0)),
        ],
        out_specs=pl.BlockSpec((None, tq, groups * D),
                               lambda bh, qi, ki: (bh // Hkv, qi, bh % Hkv)),
        scratch_shapes=[
            pltpu.VMEM((tq, groups * D), qkv3.dtype),      # roped + pre-scaled q
            pltpu.VMEM((groups, tq, 1), jnp.float32),      # m (running max)
            pltpu.VMEM((groups, tq, 1), jnp.float32),      # l (running denom)
            pltpu.VMEM((groups, tq, D), jnp.float32),      # acc
        ],
        compiler_params=pltpu.CompilerParams(
            dimension_semantics=("parallel", "parallel", "arbitrary"),
            vmem_limit_bytes=VMEM_LIMIT),
    )(qkv3, qkv3, qkv3, cos, sin, cos, sin)


def mlp_fused(x2d, ln_w, wg_t, wu_t, wd_t, *, tm_pref=256, ti_pref=256):
    """x + down(SiLU(gate(ln2(x))) * up(ln2(x))), tiled over I."""
    M, H = x2d.shape
    I = wg_t.shape[1]
    tm, ti = _pick_row_tile(M, tm_pref), _pick_tile(I, ti_pref)
    return pl.pallas_call(
        functools.partial(_mlp_kernel, eps=EPS),
        out_shape=jax.ShapeDtypeStruct((M, H), x2d.dtype),
        grid=(M // tm, I // ti),
        in_specs=[pl.BlockSpec((tm, H), lambda i, j: (i, 0)),
                  pl.BlockSpec((1, H), lambda i, j: (0, 0)),
                  pl.BlockSpec((H, ti), lambda i, j: (0, j)),
                  pl.BlockSpec((H, ti), lambda i, j: (0, j)),
                  pl.BlockSpec((ti, H), lambda i, j: (j, 0))],
        out_specs=pl.BlockSpec((tm, H), lambda i, j: (i, 0)),
        scratch_shapes=[pltpu.VMEM((tm, H), x2d.dtype),
                        pltpu.VMEM((tm, H), jnp.float32)],
        compiler_params=pltpu.CompilerParams(
            dimension_semantics=("parallel", "arbitrary"),
            vmem_limit_bytes=VMEM_LIMIT),
    )(x2d, ln_w.reshape(1, H), wg_t, wu_t, wd_t)


# ------------------------------- JAX glue ------------------------------------

def rotary_cos_sin(seq_len, dim, base=10000.0):
    inv_freq = 1.0 / (base ** (jnp.arange(0, dim, 2, dtype=jnp.float32) / dim))
    pos = jnp.arange(seq_len, dtype=jnp.float32)
    freqs = jnp.einsum("s,d->sd", pos, inv_freq)
    emb = jnp.concatenate([freqs, freqs], axis=-1)
    return jnp.cos(emb), jnp.sin(emb)           # fp32, matching the reference


def prepare_params(params):
    """One-time weight layout prep (transposes + QKV fusion) outside the kernels."""
    return {
        "ln1_w": params["ln1_w"],
        "ln2_w": params["ln2_w"],
        "wqkv_t": jnp.concatenate(
            [params["wq"].T, params["wk"].T, params["wv"].T], axis=1),
        "wo_t": params["wo"].T,
        "wg_t": params["wg"].T,
        "wu_t": params["wu"].T,
        "wd_t": params["wd"].T,
    }


def illm_llama_decoder_layer(hidden_states, prep, num_heads, num_kv_heads):
    B, S, H = hidden_states.shape
    D = H // num_heads
    M = B * S
    x2d = hidden_states.reshape(M, H)

    # --- self-attention block: ln1 fused into the single QKV projection ---
    qkv = ln_qkv(x2d, prep["ln1_w"], prep["wqkv_t"])        # (M, (Hq+2Hkv)*D)
    qkv3 = qkv.reshape(B, S, -1)                            # free reshape, no copy

    cos, sin = rotary_cos_sin(S, D)
    attn3 = flash_attention(qkv3, cos, sin, num_heads, num_kv_heads,
                            1.0 / math.sqrt(D), causal=True)   # (B, S, H)
    attn2d = attn3.reshape(M, H)                            # free reshape

    # o_proj with the attn residual add fused into the epilogue
    h2d = matmul_residual(attn2d, prep["wo_t"], x2d)

    # --- MLP block: ln2 + swiglu + down-proj + residual fused in one kernel ---
    out2d = mlp_fused(h2d, prep["ln2_w"],
                      prep["wg_t"], prep["wu_t"], prep["wd_t"])

    return out2d.reshape(B, S, H)


# -------------------------- pure-JAX reference -------------------------------

def reference_layer(x, params, num_heads, num_kv_heads):
    B, S, H = x.shape
    D = H // num_heads
    g = num_heads // num_kv_heads

    def rms(z, w):
        var = jnp.mean(z.astype(jnp.float32) ** 2, axis=-1, keepdims=True)
        return z * jax.lax.rsqrt(var + EPS) * w

    def rotate_half(t):
        d = t.shape[-1]
        return jnp.concatenate([-t[..., d // 2:], t[..., : d // 2]], axis=-1)

    neg = jnp.finfo(jnp.float32).min
    mask = jnp.where(jnp.tril(jnp.ones((S, S), bool)), 0.0, neg)[None, None]

    res = x
    h = rms(x, params["ln1_w"])
    q = (h @ params["wq"].T).reshape(B, S, num_heads, D).transpose(0, 2, 1, 3)
    k = (h @ params["wk"].T).reshape(B, S, num_kv_heads, D).transpose(0, 2, 1, 3)
    v = (h @ params["wv"].T).reshape(B, S, num_kv_heads, D).transpose(0, 2, 1, 3)
    cos, sin = rotary_cos_sin(S, D)
    c, s = cos[None, None], sin[None, None]
    q = (q * c + rotate_half(q) * s).astype(x.dtype)
    k = (k * c + rotate_half(k) * s).astype(x.dtype)
    k = jnp.repeat(k, g, axis=1)
    v = jnp.repeat(v, g, axis=1)
    sc = jnp.einsum("bhqd,bhkd->bhqk", q, k) / math.sqrt(D) + mask
    sc = jnp.maximum(sc, jnp.finfo(jnp.float32).min)
    p = jax.nn.softmax(sc.astype(jnp.float32), axis=-1).astype(q.dtype)
    o = jnp.einsum("bhqk,bhkd->bhqd", p, v)
    o = o.transpose(0, 2, 1, 3).reshape(B, S, H) @ params["wo"].T
    h = res + o
    res = h
    hn = rms(h, params["ln2_w"])
    gp = hn @ params["wg"].T
    up = hn @ params["wu"].T
    m = (gp * jax.nn.sigmoid(gp)) * up
    return res + m @ params["wd"].T


# ---------------------------------- main -------------------------------------

if __name__ == "__main__":
    # exact fp32 matmuls in the pure-JAX reference so it matches the kernel path
    jax.config.update("jax_default_matmul_precision", "highest")

    # Small but tiling-friendly shapes: D=128 keeps every block lane dim a
    # multiple of 128 and exercises the GQA path (groups=2).
    B, S = 2, 16
    NUM_HEADS, NUM_KV_HEADS = 2, 1
    D = 128
    H = NUM_HEADS * D          # 256
    INTER = 256

    key = jax.random.PRNGKey(0)
    ks = jax.random.split(key, 8)
    scale = 0.05
    params = {
        "ln1_w": jnp.ones((H,), jnp.float32),
        "ln2_w": jnp.ones((H,), jnp.float32),
        "wq": scale * jax.random.normal(ks[0], (NUM_HEADS * D, H), jnp.float32),
        "wk": scale * jax.random.normal(ks[1], (NUM_KV_HEADS * D, H), jnp.float32),
        "wv": scale * jax.random.normal(ks[2], (NUM_KV_HEADS * D, H), jnp.float32),
        "wo": scale * jax.random.normal(ks[3], (H, H), jnp.float32),
        "wg": scale * jax.random.normal(ks[4], (INTER, H), jnp.float32),
        "wu": scale * jax.random.normal(ks[5], (INTER, H), jnp.float32),
        "wd": scale * jax.random.normal(ks[6], (H, INTER), jnp.float32),
    }
    prep = prepare_params(params)   # one-time transposes / QKV fusion

    x = jax.random.normal(ks[7], (B, S, H), jnp.float32)

    out = illm_llama_decoder_layer(x, prep, NUM_HEADS, NUM_KV_HEADS)
    out = jax.block_until_ready(out)

    ref = reference_layer(x, params, NUM_HEADS, NUM_KV_HEADS)
    assert out.shape == (B, S, H)
    max_err = float(jnp.max(jnp.abs(out - ref)))
    assert jnp.allclose(out, ref, atol=2e-3, rtol=2e-3), \
        f"mismatch vs reference (max abs err {max_err})"

    # TODO(synk): quantizer fake-quant paths (use_act_quant/use_weight_quant=True),
    # past_key_value caching, output_attentions, and arbitrary additive padding
    # attention_masks (the kernel generates the causal mask in-kernel) are not
    # modeled; this is the default no-quant, no-cache causal forward path only.
    print("KERNEL_OK")
</pallas_src>

<mosaic_0001>
module attributes {stable_mosaic.version = 11 : i64} {
  func.func @_ln_qkv_kernel(%arg0: i32, %arg1: i32, %arg2: memref<16x256xf32, #tpu.memory_space<vmem>>, %arg3: memref<1x256xf32, #tpu.memory_space<vmem>>, %arg4: memref<256x256xf32, #tpu.memory_space<vmem>>, %arg5: memref<16x256xf32, #tpu.memory_space<vmem>>, %arg6: memref<16x256xf32, #tpu.memory_space<vmem>>) attributes {dimension_semantics = [#tpu.dimension_semantics<parallel>, #tpu.dimension_semantics<arbitrary>], iteration_bounds = array<i64: 2, 2>, scalar_prefetch = 0 : i64, scratch_operands = 1 : i64, tpu.core_type = #tpu.core_type<tc>, window_params = [{transform_indices = @transform_0, window_bounds = array<i64: 16, 256>}, {pipeline_mode = #tpu.pipeline_mode<synchronous>, transform_indices = @transform_1, window_bounds = array<i64: 1, 256>}, {transform_indices = @transform_2, window_bounds = array<i64: 256, 256>}, {transform_indices = @transform_3, window_bounds = array<i64: 16, 256>}]} {
    %c0_i32 = arith.constant 0 : i32
    %0 = arith.cmpi eq, %arg1, %c0_i32 : i32
    %1 = arith.extui %0 : i1 to i32
    %c0_i32_0 = arith.constant 0 : i32
    %2 = arith.cmpi ne, %1, %c0_i32_0 : i32
    scf.if %2 {
      %c0_6 = arith.constant 0 : index
      %c0_7 = arith.constant 0 : index
      %7 = vector.load %arg2[%c0_6, %c0_7] : memref<16x256xf32, #tpu.memory_space<vmem>>, vector<16x256xf32>
      %8 = arith.mulf %7, %7 : vector<16x256xf32>
      %cst_8 = arith.constant dense<0.000000e+00> : vector<16xf32>
      %9 = vector.multi_reduction <add>, %8, %cst_8 [1] : vector<16x256xf32> to vector<16xf32>
      %10 = vector.shape_cast %9 : vector<16xf32> to vector<16x1xf32>
      %cst_9 = arith.constant 2.560000e+02 : f32
      %11 = vector.broadcast %cst_9 : f32 to vector<16x1xf32>
      %12 = arith.divf %10, %11 : vector<16x1xf32>
      %cst_10 = arith.constant 9.99999997E-7 : f32
      %13 = vector.broadcast %cst_10 : f32 to vector<16x1xf32>
      %14 = arith.addf %12, %13 : vector<16x1xf32>
      %15 = math.rsqrt %14 : vector<16x1xf32>
      %16 = vector.broadcast %15 : vector<16x1xf32> to vector<16x256xf32>
      %17 = arith.mulf %7, %16 : vector<16x256xf32>
      %c0_11 = arith.constant 0 : index
      %c0_12 = arith.constant 0 : index
      %18 = vector.load %arg3[%c0_11, %c0_12] : memref<1x256xf32, #tpu.memory_space<vmem>>, vector<1x256xf32>
      %19 = vector.broadcast %18 : vector<1x256xf32> to vector<16x256xf32>
      %20 = arith.mulf %17, %19 : vector<16x256xf32>
      %c0_13 = arith.constant 0 : index
      %c0_14 = arith.constant 0 : index
      %21 = vector.load %arg6[%c0_13, %c0_14] : memref<16x256xf32, #tpu.memory_space<vmem>>, vector<16x256xf32>
      tpu.vector_store %arg6[%c0_13, %c0_14], %20 {strides = array<i32>} : memref<16x256xf32, #tpu.memory_space<vmem>>, vector<16x256xf32>,
    } else {
    }
    %c0 = arith.constant 0 : index
    %c0_1 = arith.constant 0 : index
    %3 = vector.load %arg6[%c0, %c0_1] : memref<16x256xf32, #tpu.memory_space<vmem>>, vector<16x256xf32>
    %c0_2 = arith.constant 0 : index
    %c0_3 = arith.constant 0 : index
    %4 = vector.load %arg4[%c0_2, %c0_3] : memref<256x256xf32, #tpu.memory_space<vmem>>, vector<256x256xf32>
    %cst = arith.constant dense<0.000000e+00> : vector<16x256xf32>
    %5 = tpu.matmul %3, %4, %cst {dimension_numbers = #tpu.dot_dimension_numbers<[1], [0], [0], [1], [0, 0, 1, 1], [], []>, precision = #tpu.contract_precision<fp32>} : vector<16x256xf32>, vector<256x256xf32>, vector<16x256xf32> -> vector<16x256xf32>
    %c0_4 = arith.constant 0 : index
    %c0_5 = arith.constant 0 : index
    %6 = vector.load %arg5[%c0_4, %c0_5] : memref<16x256xf32, #tpu.memory_space<vmem>>, vector<16x256xf32>
    tpu.vector_store %arg5[%c0_4, %c0_5], %5 {strides = array<i32>} : memref<16x256xf32, #tpu.memory_space<vmem>>, vector<16x256xf32>,
    return
  }
  func.func @transform_0(%arg0: i32, %arg1: i32) -> (i32, i32) {
    %c0_i32 = arith.constant 0 : i32
    %c0_i32_0 = arith.constant 0 : i32
    return %arg0, %c0_i32 : i32, i32
  }
  func.func @transform_1(%arg0: i32, %arg1: i32) -> (i32, i32) {
    %c0_i32 = arith.constant 0 : i32
    %c0_i32_0 = arith.constant 0 : i32
    %c0_i32_1 = arith.constant 0 : i32
    return %c0_i32, %c0_i32_0 : i32, i32
  }
  func.func @transform_2(%arg0: i32, %arg1: i32) -> (i32, i32) {
    %c0_i32 = arith.constant 0 : i32
    %c0_i32_0 = arith.constant 0 : i32
    return %c0_i32, %arg1 : i32, i32
  }
  func.func @transform_3(%arg0: i32, %arg1: i32) -> (i32, i32) {
    %c0_i32 = arith.constant 0 : i32
    return %arg0, %arg1 : i32, i32
  }
}

</mosaic_0001>

<bundles_post_ra>
// kernel: tpu_custom_call.1
= control target key start
LH: loop header
LB: loop body
LE: loop exit
PB: predicated region body
PF: predicated region fallthrough
CT: control target
= control target key end

     0   :  { %s3951_s0 = inlined_call_operand.hbm [shape: f32[32,256], index: 0, kind: input, shape index: {}]   ;;  %s3952_s1 = inlined_call_operand.hbm [shape: f32[1,256], index: 1, kind: input, shape index: {}]   ;;  %s3953_s2 = inlined_call_operand.hbm [shape: f32[256,512], index: 2, kind: input, shape index: {}]   ;;  %s3954_s3 = inlined_call_operand.hbm [shape: f32[32,512], index: 3, kind: output, shape index: {}]  }
   0x1   :  { %4175 = sst [smem:[#allocation111_spill]] %s3951_s0 }
   0x2   :  { %4176 = sst [smem:[#allocation112_spill]] %s3952_s1 }
   0x3   :  { %4177 = sst [smem:[#allocation113_spill]] %s3954_s3 }
   0x4   :  { %8 = vsyncpa [#allocation4], 0 }
   0x5   :  { %10 = vsyncpa [#allocation4 + $0x1], 0 }
   0x6   :  { %11 = vsyncpa [#allocation7], 0 }
   0x7   :  { %12 = vsyncpa [#allocation5], 0 }
   0x8   :  { %14 = vsyncpa [#allocation5 + $0x1], 0  ;;  %s2306_s12 = smov 0   ;;  %s2308_s13 = smov 0  }
   0x9   :  { %s2310_s14 = smov 0   ;;  %s2312_s15 = smov 0  }
   0xa   :  { %s2314_s16 = smov 0   ;;  %s2316_s17 = smov 0  }
   0xb   :  { %s2318_s18 = smov 0   ;;  %s2320_s19 = smov 0  }
   0xc   :  { %s2322_s20 = smov 0   ;;  %s2324_s21 = smov 0  }
   0xd   :  { %s2326_s22 = smov 0   ;;  %s2328_s23 = smov 0  }
   0xe   :  { %s2330_s24 = smov 0   ;;  %s2332_s25 = smov 0  }
   0xf LB: > { %4178 = sst [smem:[#allocation14_spill]] %s2258_s21  ;;  %s29_s26 = sadd.s32 1, %s2266_s23  ;;  %s2274_s25 = sphi %s2332_s25, %s20_s25   ;;  %s2270_s24 = sphi %s2330_s24, %s4567_s24   ;;  %s2266_s23 = sphi %s2328_s23, %s4578_s23   ;;  %s2262_s22 = sphi %s2326_s22, %s4565_s22   ;;  %s2258_s21 = sphi %s2324_s21, %s4577_s21   ;;  %s2254_s20 = sphi %s2322_s20, %s4576_s20   ;;  %s2250_s19 = sphi %s2320_s19, %s4575_s19   ;;  %s2246_s18 = sphi %s2318_s18, %s4574_s18   ;;  %s2242_s17 = sphi %s2316_s17, %s4573_s17   ;;  %s2238_s16 = sphi %s2314_s16, %s4572_s16   ;;  %s2234_s15 = sphi %s2312_s15, %s4571_s15   ;;  %s2230_s14 = sphi %s2310_s14, %s4570_s14   ;;  %s2226_s13 = sphi %s2308_s13, %s4569_s13   ;;  %s2222_s12 = sphi %s2306_s12, %s4568_s12  }
  0x10   : > { %4179 = sst [smem:[#allocation15_spill]] %s2262_s22  ;;  %s32_s27 = sadd.s32 1, %s2270_s24 }
  0x11   : > { %4180 = sst [smem:[#allocation16_spill]] %s2270_s24  ;;  %p30_p0 = scmp.ge.s32.totalorder %s29_s26, 2 }
  0x12   : > { %s39_s28 = sadd.s32 1, %s2254_s20  ;;  %p46_p1 = scmp.ne.s32.totalorder %s2254_s20, %s2250_s19 }
  0x13   : > { %p47_p2 = scmp.eq.s32.totalorder %s2274_s25, 0  ;;  %s4580_s26 = smov (%p30_p0, %s29_s26), 0 }
  0x14   : > { %4181 = sst [smem:[#allocation17_spill]] %s4580_s26  ;;  %s4582_s27 = smov (!%p30_p0, %s32_s27), %s2270_s24 }
  0x15   : > { %p2387_p3 = por %p47_p2, %p46_p1  ;;  %s2393_s30 = ssub.s32 %s2266_s23, %s4580_s26 }
  0x16   : > { %p34_p4 = scmp.ge.s32.totalorder %s4582_s27, 2  ;;  %p84_p5 = scmp.eq.s32.totalorder %s2393_s30, 0 }
  0x17   : > { %p3958_p6 = scmp.lt.s32.totalorder %s2274_s25, 4  ;;  %s162_s4 = sand.u32 1, %s2274_s25  }
  0x18   : > { %s4584_s27 = smov (%p34_p4, %s4582_s27), 0  ;;  %s164_s5 = sand.u32 1, %s2254_s20  }
  0x19   : > { %4183 = sst [smem:[#allocation18_spill]] %s4584_s27  ;;  %s36_s6 = ssub.s32 %s2270_s24, %s4584_s27 }
  0x1a   : > { %p37_p7 = scmp.eq.s32.totalorder %s36_s6, 0  ;;  %s111_s7 = sor.u32 %s2393_s30, %s36_s6 }
  0x1b   : > { %p2404_p8 = scmp.eq.s32.totalorder %s111_s7, 0  ;;  %s1864_s9 = sshll.u32 %s164_s5, 5 }
  0x1c   : > { %s2409_s10 = scalar_select %p37_p7, %s2254_s20, %s39_s28  }
  0x1d   : > { %s1885_s11 = sshll.u32 %s2270_s24, 9  ;;  %s4186_s0 = sld [smem:[#allocation111_spill]] }
  0x1e   : > { %4185 = sst [smem:[#allocation19_spill]] %s2409_s10  ;;  %s166_s21 = scalar_lea.vmem [#allocation3], %s1864_s9 }
  0x1f   : > { %s174_s1 = sshll.u32 %s166_s21, 4  ;;  %p2419_p9 = pnand %p3958_p6, %p2387_p3  ;;  %s175_s1 = int_to_ptr.vmem [resolvable:$true] %s174_s1 }
  0x20   : > { %s2423_s6 = scalar_lea.sflag [#allocation4], %s162_s4  ;;  %s2053_s28 = scalar_lea.vmem %s175_s1, 512 }
  0x21   : > { %p2042_p10 = pneg %p2419_p9  ;;  %p2054_p11 = scmp.ne.s32.totalorder %s175_s1, %s2053_s28 }
  0x22   : > { %s2276_s3 = smov [#allocation3]  }
  0x23   : > { %s173_s22 = scalar_lea.hbm %s4186_s0, %s1885_s11  ;;  %p2056_p12 = pnand %p2054_p11, %p2042_p10 }
  0x24   : > { %s2058_s26 = sshll.u32 %s2276_s3, 4  ;;  %s2059_s26 = int_to_ptr.vmem [resolvable:$false] %s2058_s26 }
  0x25   : > { %p2057_p13 = pneg %p2056_p12  ;;  %s2060_s21 = scalar_lea.vmem %s2059_s26, 1024 }
  0x26   : > { %p2061_p0 = scmp.lt.s32.totalorder %s175_s1, %s2059_s26  ;;  %p2062_p1 = scmp.lt.s32.totalorder %s2060_s21, %s2053_s28 }
  0x28   : > { %p2063_p4 = por %p2062_p1, %p2061_p0 }
  0x2a   : > { %p2064_p3 = pnand %p2063_p4, %p2057_p13 }
  0x2c   : > { %2067 = shalt.err (!%p2064_p3)
}
  0x2d   : > { %s3959_s29 = smov 256   ;;  %s3960_s4 = smov 16  }
  0x2e   : > { %1905 = dma.hbm_to_vmem [thread:$0]  (!%p2419_p9), %s173_s22, 512, %s175_s1, %s2423_s6, %s3959_s29, %s3959_s29, %s3960_s4  }
  0x2f   : > { %s2434_s5 = sadd.s32 4294967295, %s2274_s25   ;;  %s1860_s7 = sadd.s32 4294967294, %s2274_s25  }
  0x30   : > { %p52_p7 = scmp.ne.s32.totalorder %s2250_s19, %s2246_s18  ;;  %p3962_p10 = scmp.eq.s32.totalorder %s2434_s5, 0 }
  0x31   : > { %s86_s27 = sadd.s32 1, %s2242_s17  ;;  %p93_p9 = scmp.ne.s32.totalorder %s2242_s17, %s2238_s16 }
  0x32   : > { %s2444_s9 = scalar_select %p84_p5, %s2242_s17, %s86_s27  }
  0x33   : > { %p2448_p11 = por %p3962_p10, %p52_p7  ;;  %p99_p12 = scmp.ne.s32.totalorder %s2238_s16, %s2234_s15 }
  0x34   : > { %s114_s22 = sadd.s32 1, %s2230_s14  ;;  %p2459_p13 = por %p93_p9, %p47_p2 }
  0x35   : > { %s4188_s1 = scalar_select %p2448_p11, 1, 0 }
  0x36   : > { %p124_p0 = scmp.ne.s32.totalorder %s2230_s14, %s2226_s13  ;;  %p2467_p5 = por %p99_p12, %p3962_p10 }
  0x37   : > { %p125_p1 = scmp.eq.s32.totalorder %s2434_s5, 3  ;;  %p130_p2 = scmp.ne.s32.totalorder %s2226_s13, %s2222_s12 }
  0x38   : > { %s4190_s18 = scalar_select %p2467_p5, 1, 0 }
  0x39   : > { %s2475_s30 = scalar_select %p2404_p8, %s2230_s14, %s114_s22  }
  0x3a   : > { %p2477_p4 = por %p125_p1, %p124_p0  ;;  %p131_p3 = scmp.eq.s32.totalorder %s1860_s7, 3 }
  0x3b   : > { %p1861_p7 = scmp.ge.s32.totalorder %s2274_s25, 1  ;;  %p138_p9 = scmp.lt.s32.totalorder %s2274_s25, 5 }
  0x3c   : > { %s4191_s15 = scalar_select %p2477_p4, 1, 0 }
  0x3d   : > { %p2485_p6 = por %p131_p3, %p130_p2  ;;  %p2489_p12 = pnand %p1861_p7, %p138_p9 }
  0x3e   : > { %s2279_s8 = smov [#allocation6]   ;;  %p4194_p8 = scmp.lt.s32.totalorder %s2274_s25, 4 }
  0x3f   : > { %s4192_s28 = scalar_select %p2485_p6, 1, 0 }
  0x40   : > { %s151_s26 = sshll.u32 %s2279_s8, 4  ;;  %p2497_p0 = pnand %p4194_p8, %p2459_p13  ;;  %s152_s26 = int_to_ptr.vmem [resolvable:$true] %s151_s26 }
  0x41   : > { %p1898_p1 = pneg %p2489_p12  ;;  %s186_s7 = sand.u32 1, %s2242_s17  }
  0x42   : > { %s1868_s27 = sshll.u32 %s186_s7, 9  ;;  %s1886_s29 = sshll.u32 %s2266_s23, 8 }
  0x43   : > { %p2506_p2 = pnand %p1898_p1, %p3962_p10  ;;  %s188_s4 = scalar_lea.vmem [#allocation8], %s1868_s27 }
  0x44   : > { %s195_s8 = sshll.u32 %s188_s4, 4  ;;  %s2514_s24 = scalar_lea.hbm %s3953_s2, %s1886_s29  ;;  %s196_s8 = int_to_ptr.vmem [resolvable:$true] %s195_s8 }
  0x45   : > { %p2070_p13 = pneg %p2506_p2  ;;  %s2079_s10 = scalar_lea.vmem %s152_s26, 32 }
  0x46   : > { %p2080_p3 = scmp.ne.s32.totalorder %s152_s26, %s2079_s10  ;;  %p2087_p8 = scmp.lt.s32.totalorder %s152_s26, %s152_s26 }
  0x47   : > { %p2088_p1 = scmp.lt.s32.totalorder %s2079_s10, %s2079_s10 }
  0x48   : > { %p2082_p7 = pnand %p2080_p3, %p2070_p13 }
  0x49   : > { %p2089_p10 = por %p2088_p1, %p2087_p8 }
  0x4a   : > { %p2083_p9 = pneg %p2082_p7 }
  0x4c   : > { %p2090_p6 = pnand %p2089_p10, %p2083_p9 }
  0x4e   : > { %2093 = shalt.err (!%p2090_p6)
}
  0x4f   : > { %s4197_s27 = sld [smem:[#allocation112_spill]]  ;;  %p2096_p4 = pneg %p2497_p0 }
  0x50   : > { %s2107_s0 = scalar_lea.vmem %s196_s8, 8192  ;;  %s2280_s29 = smov [#allocation8]  }
  0x51   : > { %p2108_p5 = scmp.ne.s32.totalorder %s196_s8, %s2107_s0  ;;  %s2112_s11 = sshll.u32 %s2280_s29, 4  ;;  %s2113_s11 = int_to_ptr.vmem [resolvable:$false] %s2112_s11 }
  0x52   : > { %s2114_s10 = scalar_lea.vmem %s2113_s11, 16384  ;;  %p2115_p10 = scmp.lt.s32.totalorder %s196_s8, %s2113_s11 }
  0x53   : > { %p2110_p11 = pnand %p2108_p5, %p2096_p4  ;;  %p2116_p6 = scmp.lt.s32.totalorder %s2114_s10, %s2107_s0 }
  0x55   : > { %1901 = dma.hbm_to_vmem [thread:$0]  (!%p2506_p2), %s4197_s27, 32, %s152_s26, [#allocation7]  }
  0x56   : > { %p2111_p13 = pneg %p2110_p11  ;;  %p2117_p3 = por %p2116_p6, %p2115_p10 }
  0x58   : > { %p2118_p7 = pnand %p2117_p3, %p2111_p13 }
  0x5a   : > { %2121 = shalt.err (!%p2118_p7)
}
  0x5b   : > { %s2281_s22 = smov 512   ;;  %s4198_s26 = smov 16  }
  0x5c   : > { %s4199_s7 = smov 256   ;;  %207 = sbr.rel (%p2489_p12) target bundleno = 739 (0x2e3), region = 32 }
  0x5d   : > { %1908 = dma.hbm_to_vmem [thread:$0]  (!%p2497_p0), %s2514_s24, 8192, %s196_s8, %s2423_s6, %s2281_s22, %s4199_s7, %s4198_s26  }
  0x61   : > { %s209_s4 = sand.u32 1, %s2434_s5   ;;  %s211_s27 = sand.u32 1, %s2250_s19  }
  0x62   : > { %s1872_s0 = sshll.u32 %s211_s27, 5  ;;  %s210_s29 = scalar_lea.sflag [#allocation4], %s209_s4 }
  0x63   : > { %s213_s11 = scalar_lea.vmem [#allocation3], %s1872_s0  ;;  %p4200_p11 = scmp.ne.s32.totalorder %s4188_s1, 0 }
  0x65   : > { %2205 = dma.done.wait (%p4200_p11), %s210_s29, 512  }
  0x66   : > { %2207 = vsyncadd (%p4200_p11), %s210_s29, 4294966784  ;;  %p4201_p5 = scmp.eq.s32.totalorder %s2434_s5, 0 }
  0x68   : > { %2209 = dma.done.wait (%p4201_p5), [#allocation7], 32   ;;  %p4202_p4 = pmov %p4201_p5 }
  0x69   : > { %s224_s24 = sand.u32 1, %s2238_s16   ;;  %p4203_p12 = scmp.ne.s32.totalorder %s4190_s18, 0 }
  0x6a   : > { %2211 = vsyncadd (%p4202_p4), [#allocation7], 4294967264  ;;  %s1874_s6 = sshll.u32 %s224_s24, 9 }
  0x6b   : > { %s2544_s3 = scalar_lea.vmem [#allocation8], %s1874_s6 }
  0x6c   : > { %2213 = dma.done.wait (%p4203_p12), %s210_s29, 8192  }
  0x6d   : > { %2215 = vsyncadd (%p4203_p12), %s210_s29, 4294959104  ;;  %s251_s1 = sand.u32 1, %s2226_s13   ;;  %s4204_s5 = sld [smem:[#allocation14_spill]] }
  0x6e   : > { %s1875_s21 = sshll.u32 %s251_s1, 5 }
  0x6f   : > { %s2553_s8 = scalar_lea.vmem [#allocation9], %s1875_s21 }
  0x73   : > { %p1876_p0 = scmp.ne.s32.totalorder %s4204_s5, 0 }
  0x75   : > { %261 = sbr.rel (%p1876_p0) target bundleno = 292 (0x124), region = 48 }
  0x7a   : > { %v262_v0 = vld [vmem:[%s213_s11] sm:$0xff]  ;;  %v263_v1 = vld [vmem:[%s213_s11 + $0x8] sm:$0xff]  ;;  %v264_v2 = vld [vmem:[%s213_s11 + $0x10] sm:$0xff]  ;;  %v289_v14 = vlaneseq }
  0x7b   : > { %v266_v3 = vmul.f32 %v262_v0, %v262_v0  ;;  %v267_v4 = vmul.f32 %v263_v1, %v263_v1  ;;  %v265_v5 = vld [vmem:[%s213_s11 + $0x18] sm:$0xff]  ;;  %v268_v6 = vmul.f32 %v264_v2, %v264_v2  ;;  %v287_v20 = vld [vmem:[#allocation6] sm:$0x3] }
  0x7c   : > { %v269_v7 = vmul.f32 %v265_v5, %v265_v5  ;;  %v290_v17 = vshrl.u32 %v289_v14, 7 }
  0x7d   : > { %v270_v8 = vadd.f32 %v267_v4, %v266_v3 }
  0x7e   : > { %v273_v9 = vadd.f32 %v269_v7, %v268_v6  ;;  %v291_v18 = vsub.s32 0, %v290_v17  ;;  %v295_v19 = vsub.s32 1, %v290_v17 }
  0x7f   : > { %271 = vadd.xlane.f32.xlu0 %v270_v8 }
  0x80   : > { %v292_v21 = vrot.slane %v287_v20, %v291_v18  ;;  %v296_v22 = vrot.slane %v287_v20, %v295_v19 }
  0x83   : > { %274 = vadd.xlane.f32.xlu0 %v273_v9 }
 0x108   : > { %v272_v10 = vpop.xlane.xlu0 %271 }
 0x109   : > { %v277_v11 = vmul.f32 0.00390625, %v272_v10 }
 0x10b   : > { %v279_v12 = vadd.f32 1e-06, %v277_v11 }
 0x10c   : > { %v275_v13 = vpop.xlane.xlu0 %274 }
 0x10d   : > { %2036 = vrsqrt.f32 %v279_v12  ;;  %v278_v15 = vmul.f32 0.00390625, %v275_v13 }
 0x10f   : > { %v280_v16 = vadd.f32 1e-06, %v278_v15 }
 0x111   : > { %2038 = vrsqrt.f32 %v280_v16 }
 0x11a   : > { %v2037_v23 = vpop.eup %2036 }
 0x11b   : > { %v283_v24 = vmul.f32 %v2037_v23, %v262_v0  ;;  %v284_v25 = vmul.f32 %v2037_v23, %v263_v1 }
 0x11d   : > { %v299_v26 = vmul.f32 %v292_v21, %v283_v24  ;;  %v300_v27 = vmul.f32 %v296_v22, %v284_v25 }
 0x11e   : > { %v2039_v28 = vpop.eup %2038 }
 0x11f   : > { %303 = vst [vmem:[#allocation2 + $0x10] sm:$0xff] %v299_v26  ;;  %304 = vst [vmem:[#allocation2] sm:$0xff] %v300_v27  ;;  %v285_v29 = vmul.f32 %v2039_v28, %v264_v2  ;;  %v286_v30 = vmul.f32 %v2039_v28, %v265_v5 }
 0x121   : > { %v301_v31 = vmul.f32 %v292_v21, %v285_v29  ;;  %v302_v32 = vmul.f32 %v296_v22, %v286_v30 }
 0x123   : > { %305 = vst [vmem:[#allocation2 + $0x18] sm:$0xff] %v301_v31  ;;  %306 = vst [vmem:[#allocation2 + $0x8] sm:$0xff] %v302_v32 }
 0x124 PF: > { %v342_v33 = vld [vmem:[%s2544_s3 + $0xf8] sm:$0xff]  ;;  %v341_v34 = vld [vmem:[%s2544_s3 + $0xf0] sm:$0xff]  ;;  %v340_v35 = vld [vmem:[%s2544_s3 + $0xe8] sm:$0xff]  ;;  %s4558_s18 = sld [smem:[#allocation14_spill]]  ;;  %s1742_s27 = sshll.u32 %s2553_s8, 4  ;;  %s3870_s27 = int_to_ptr.vmem [resolvable:$true] %s1742_s27 }
 0x125   : > { %v2559_v36 = vand.u32 4294901760, %v342_v33  ;;  %v2561_v37 = vand.u32 4294901760, %v341_v34  ;;  %v2563_v38 = vand.u32 4294901760, %v340_v35  ;;  %v339_v39 = vld [vmem:[%s2544_s3 + $0xe0] sm:$0xff]  ;;  %v338_v40 = vld [vmem:[%s2544_s3 + $0xd8] sm:$0xff]  ;;  %v337_v41 = vld [vmem:[%s2544_s3 + $0xd0] sm:$0xff] }
 0x126   : > { %v2568_v42 = vand.u32 4294901760, %v339_v39  ;;  %v2570_v43 = vand.u32 4294901760, %v338_v40  ;;  %v2572_v44 = vand.u32 4294901760, %v337_v41  ;;  %v336_v45 = vld [vmem:[%s2544_s3 + $0xc8] sm:$0xff]  ;;  %v335_v46 = vld [vmem:[%s2544_s3 + $0xc0] sm:$0xff]  ;;  %v334_v47 = vld [vmem:[%s2544_s3 + $0xb8] sm:$0xff] }
 0x127   : > { %376 = vmatprep.subr.mxu0 %v2559_v36  ;;  %v2578_v48 = vand.u32 4294901760, %v336_v45  ;;  %v2580_v49 = vand.u32 4294901760, %v335_v46  ;;  %v2582_v50 = vand.u32 4294901760, %v334_v47  ;;  %v2585_v51 = vsub.f32 %v342_v33, %v2559_v36  ;;  %v2588_v52 = vld [vmem:[%s2544_s3 + $0xb0] sm:$0xff]  ;;  %v2591_v53 = vld [vmem:[%s2544_s3 + $0xa8] sm:$0xff]  ;;  %v2594_v54 = vld [vmem:[%s2544_s3 + $0xa0] sm:$0xff] }
 0x128   : > { %378 = vmatpush1.msra.mxu0 %v2561_v37  ;;  %v2598_v55 = vand.u32 4294901760, %v2588_v52  ;;  %v2601_v56 = vsub.f32 %v341_v34, %v2561_v37  ;;  %v2604_v57 = vand.u32 4294901760, %v2591_v53  ;;  %v2607_v58 = vsub.f32 %v340_v35, %v2563_v38  ;;  %v2610_v59 = vld [vmem:[%s2544_s3 + $0x98] sm:$0xff]  ;;  %v2613_v60 = vld [vmem:[%s2544_s3 + $0x90] sm:$0xff]  ;;  %v2616_v61 = vld [vmem:[%s2544_s3 + $0x88] sm:$0xff]  ;;  %s4559_s10 = sld [smem:[#allocation15_spill]] }
 0x129   : > { %380 = vmatprep.subr.mxu0 %v2563_v38  ;;  %v3979_v62 = vand.u32 4294901760, %v2585_v51  ;;  %v2621_v63 = vand.u32 4294901760, %v2594_v54  ;;  %v2624_v0 = vsub.f32 %v339_v39, %v2568_v42  ;;  %v2627_v1 = vand.u32 4294901760, %v2610_v59  ;;  %v2639_v6 = vld [vmem:[%s2544_s3 + $0x80] sm:$0xff]  ;;  %v2664_v15 = vld [vmem:[%s2544_s3 + $0x78] sm:$0xff]  ;;  %v2675_v20 = vld [vmem:[%s2544_s3 + $0x70] sm:$0xff] }
 0x12a   : > { %4205 = vst [vmem:[#allocation20_spill] sm:$0xff] %v2604_v57  ;;  %382 = vmatpush1.msra.mxu0 %v2568_v42  ;;  %v3978_v2 = vand.u32 4294901760, %v2601_v56  ;;  %v3976_v3 = vand.u32 4294901760, %v2607_v58  ;;  %v2633_v4 = vsub.f32 %v338_v40, %v2570_v43  ;;  %v2636_v5 = vand.u32 4294901760, %v2613_v60  ;;  %v2683_v25 = vld [vmem:[%s2544_s3 + $0x68] sm:$0xff]  ;;  %v2696_v30 = vld [vmem:[%s2544_s3 + $0x60] sm:$0xff] }
 0x12b   : > { %4206 = vst [vmem:[#allocation21_spill] sm:$0xff] %v2621_v63  ;;  %4207 = vst [vmem:[#allocation22_spill] sm:$0xff] %v2627_v1  ;;  %384 = vmatprep.subr.mxu0 %v2570_v43  ;;  %v539_v7 = vsub.f32 %v2585_v51, %v3979_v62  ;;  %v3975_v8 = vand.u32 4294901760, %v2624_v0  ;;  %v2647_v9 = vsub.f32 %v337_v41, %v2572_v44  ;;  %v2650_v10 = vand.u32 4294901760, %v2616_v61  ;;  %v2709_v35 = vld [vmem:[%s2544_s3 + $0x58] sm:$0xff]  ;;  %s1879_s22 = sshll.u32 %s4558_s18, 1 }
 0x12c   : > { %4208 = vst [vmem:[#allocation23_spill] sm:$0xff] %v2636_v5  ;;  %386 = vmatpush1.msra.mxu0 %v2572_v44  ;;  %v545_v11 = vsub.f32 %v2601_v56, %v3978_v2  ;;  %v551_v12 = vsub.f32 %v2607_v58, %v3976_v3  ;;  %v3972_v13 = vand.u32 4294901760, %v2633_v4  ;;  %v2661_v14 = vsub.f32 %v336_v45, %v2578_v48  ;;  %v2817_v3 = vld [vmem:[%s2544_s3 + $0x20] sm:$0xff]  ;;  %v2829_v2 = vld [vmem:[%s2544_s3 + $0x18] sm:$0xff]  ;;  %s4560_s11 = sld [smem:[#allocation113_spill]]  ;;  %s3876_s6 = scalar_lea.sflag [#allocation5], %s251_s1 }
 0x12d   : > { %4209 = vst [vmem:[#allocation24_spill] sm:$0xff] %v2650_v10  ;;  %388 = vmatprep.subr.mxu0 %v2578_v48  ;;  %v540_v16 = vand.u32 4294901760, %v539_v7  ;;  %v557_v17 = vsub.f32 %v2624_v0, %v3975_v8  ;;  %v3971_v18 = vand.u32 4294901760, %v2647_v9  ;;  %v2672_v19 = vand.u32 4294901760, %v2639_v6  ;;  %p4561_p9 = scmp.ne.s32.totalorder %s4191_s15, 0  ;;  %s2282_s21 = smov [#allocation9]  }
 0x12e   : > { %390 = vmatpush1.msra.mxu0 %v2580_v49  ;;  %v546_v21 = vand.u32 4294901760, %v545_v11  ;;  %v552_v22 = vand.u32 4294901760, %v551_v12  ;;  %v563_v23 = vsub.f32 %v2633_v4, %v3972_v13  ;;  %v3969_v24 = vand.u32 4294901760, %v2661_v14  ;;  %s1887_s26 = sshll.u32 %s4559_s10, 3  ;;  %s2126_s5 = sshll.u32 %s2282_s21, 4  ;;  %s2127_s5 = int_to_ptr.vmem [resolvable:$false] %s2126_s5 }
 0x12f   : > { %4210 = vst [vmem:[#allocation25_spill] sm:$0xff] %v2672_v19  ;;  %392 = vmatprep.subr.mxu0 %v2582_v50  ;;  %541 = vmatprep.subr.mxu1 %v540_v16  ;;  %v558_v26 = vand.u32 4294901760, %v557_v17  ;;  %v569_v27 = vsub.f32 %v2647_v9, %v3971_v18  ;;  %v2690_v28 = vsub.f32 %v335_v46, %v2580_v49  ;;  %v2693_v29 = vand.u32 4294901760, %v2664_v15  ;;  %v2721_v46 = vld [vmem:[%s2544_s3 + $0x50] sm:$0xff]  ;;  %s1739_s7 = sadd.s32 %s1887_s26, %s1879_s22  ;;  %s2128_s18 = scalar_lea.vmem %s2127_s5, 1024 }
 0x130   : > { %394 = vmatpush1.msra.mxu0 %v2598_v55  ;;  %547 = vmatpush1.msra.mxu1 %v546_v21  ;;  %v564_v31 = vand.u32 4294901760, %v563_v23  ;;  %v575_v32 = vsub.f32 %v2661_v14, %v3969_v24  ;;  %v2703_v33 = vsub.f32 %v334_v47, %v2582_v50  ;;  %v2706_v34 = vand.u32 4294901760, %v2675_v20  ;;  %v2745_v21 = vld [vmem:[%s2544_s3 + $0x48] sm:$0xff]  ;;  %v2792_v18 = vld [vmem:[%s2544_s3 + $0x30] sm:$0xff]  ;;  %s1881_s4 = sshll.u32 %s1739_s7, 7  ;;  %p2129_p13 = scmp.lt.s32.totalorder %s3870_s27, %s2127_s5 }
 0x131   : > { %4211 = vst [vmem:[#allocation26_spill] sm:$0xff] %v2693_v29  ;;  %396 = vmatprep.subr.mxu0 %v2604_v57  ;;  %553 = vmatprep.subr.mxu1 %v552_v22  ;;  %v570_v39 = vand.u32 4294901760, %v569_v27  ;;  %v3968_v40 = vand.u32 4294901760, %v2690_v28  ;;  %v2715_v41 = vsub.f32 %v2588_v52, %v2598_v55  ;;  %v2718_v45 = vand.u32 4294901760, %v2683_v25 }
 0x132   : > { %4212 = vst [vmem:[#allocation27_spill] sm:$0xff] %v2706_v34  ;;  %398 = vmatpush1.msra.mxu0 %v2621_v63  ;;  %559 = vmatpush1.msra.mxu1 %v558_v26  ;;  %v576_v47 = vand.u32 4294901760, %v575_v32  ;;  %v3966_v7 = vand.u32 4294901760, %v2703_v33  ;;  %v2727_v11 = vsub.f32 %v2591_v53, %v2604_v57  ;;  %v2730_v12 = vand.u32 4294901760, %v2696_v30  ;;  %s3868_s24 = scalar_lea.hbm %s4560_s11, %s1881_s4 }
 0x133   : > { %4213 = vst [vmem:[#allocation28_spill] sm:$0xff] %v2718_v45  ;;  %400 = vmatprep.subr.mxu0 %v2627_v1  ;;  %565 = vmatprep.subr.mxu1 %v564_v31  ;;  %v581_v52 = vsub.f32 %v2690_v28, %v3968_v40  ;;  %v3967_v16 = vand.u32 4294901760, %v2715_v41  ;;  %v2739_v17 = vsub.f32 %v2594_v54, %v2621_v63  ;;  %v2742_v53 = vand.u32 4294901760, %v2709_v35  ;;  %v2780_v40 = vld [vmem:[%s2544_s3 + $0x38] sm:$0xff] }
 0x134   : > { %4214 = vst [vmem:[#allocation29_spill] sm:$0xff] %v2730_v12  ;;  %402 = vmatpush1.msra.mxu0 %v2636_v5  ;;  %571 = vmatpush1.msra.mxu1 %v570_v39  ;;  %v587_v22 = vsub.f32 %v2703_v33, %v3966_v7  ;;  %v3970_v23 = vand.u32 4294901760, %v2727_v11  ;;  %v2754_v26 = vsub.f32 %v2610_v59, %v2627_v1  ;;  %v2757_v54 = vand.u32 4294901760, %v2721_v46  ;;  %v2769_v59 = vld [vmem:[%s2544_s3 + $0x40] sm:$0xff] }
 0x135   : > { %4215 = vst [vmem:[#allocation30_spill] sm:$0xff] %v2742_v53  ;;  %404 = vmatprep.subr.mxu0 %v2650_v10  ;;  %577 = vmatprep.subr.mxu1 %v576_v47  ;;  %v582_v27 = vand.u32 4294901760, %v581_v52  ;;  %v593_v31 = vsub.f32 %v2715_v41, %v3967_v16  ;;  %v3973_v32 = vand.u32 4294901760, %v2739_v17  ;;  %v2766_v39 = vsub.f32 %v2613_v60, %v2636_v5  ;;  %v2902_v5 = vld [vmem:[%s2544_s3 + $0x1f8] sm:$0xff] }
 0x136   : > { %4216 = vst [vmem:[#allocation31_spill] sm:$0xff] %v2757_v54  ;;  %406 = vmatpush1.msra.mxu0 %v2672_v19  ;;  %v588_v7 = vand.u32 4294901760, %v587_v22  ;;  %v599_v47 = vsub.f32 %v2727_v11, %v3970_v23  ;;  %v3974_v52 = vand.u32 4294901760, %v2754_v26  ;;  %v2777_v16 = vand.u32 4294901760, %v2745_v21 }
 0x137   : > { %583 = vmatpush1.msra.mxu1 %v582_v27  ;;  %408 = vmatprep.subr.mxu0 %v2693_v29  ;;  %v594_v60 = vand.u32 4294901760, %v593_v31  ;;  %v605_v22 = vsub.f32 %v2739_v17, %v3973_v32  ;;  %v3977_v24 = vand.u32 4294901760, %v2766_v39  ;;  %v2789_v23 = vsub.f32 %v2616_v61, %v2650_v10  ;;  %v2806_v61 = vld [vmem:[%s2544_s3 + $0x28] sm:$0xff] }
 0x138   : > { %4217 = vst [vmem:[#allocation32_spill] sm:$0xff] %v2777_v16  ;;  %589 = vmatprep.subr.mxu1 %v588_v7  ;;  %410 = vmatpush1.msra.mxu0 %v2706_v34  ;;  %v600_v27 = vand.u32 4294901760, %v599_v47  ;;  %v611_v31 = vsub.f32 %v2754_v26, %v3974_v52  ;;  %v2799_v13 = vand.u32 4294901760, %v2769_v59  ;;  %v2803_v32 = vsub.f32 %v2639_v6, %v2672_v19 }
 0x139   : > { %595 = vmatpush1.msra.mxu1 %v594_v60  ;;  %412 = vmatprep.subr.mxu0 %v2718_v45  ;;  %v606_v7 = vand.u32 4294901760, %v605_v22  ;;  %v617_v47 = vsub.f32 %v2766_v39, %v3977_v24  ;;  %v3980_v52 = vand.u32 4294901760, %v2789_v23  ;;  %v2814_v8 = vand.u32 4294901760, %v2780_v40 }
 0x13a   : > { %4218 = vst [vmem:[#allocation33_spill] sm:$0xff] %v2799_v13  ;;  %601 = vmatprep.subr.mxu1 %v600_v27  ;;  %414 = vmatpush1.msra.mxu0 %v2730_v12  ;;  %v612_v6 = vand.u32 4294901760, %v611_v31  ;;  %v3985_v60 = vand.u32 4294901760, %v2803_v32  ;;  %v2823_v22 = vsub.f32 %v2664_v15, %v2693_v29  ;;  %v2826_v24 = vand.u32 4294901760, %v2792_v18 }
 0x13b   : > { %4219 = vst [vmem:[#allocation34_spill] sm:$0xff] %v2814_v8  ;;  %607 = vmatpush1.msra.mxu1 %v606_v7  ;;  %416 = vmatprep.subr.mxu0 %v2742_v53  ;;  %v618_v62 = vand.u32 4294901760, %v617_v47  ;;  %v623_v27 = vsub.f32 %v2789_v23, %v3980_v52  ;;  %v2837_v31 = vsub.f32 %v2675_v20, %v2706_v34  ;;  %v2840_v15 = vand.u32 4294901760, %v2806_v61  ;;  %v2855_v20 = vld [vmem:[%s2544_s3 + $0x10] sm:$0xff] }
 0x13c   : > { %4220 = vst [vmem:[#allocation35_spill] sm:$0xff] %v2826_v24  ;;  %613 = vmatprep.subr.mxu1 %v612_v6  ;;  %418 = vmatpush1.msra.mxu0 %v2757_v54  ;;  %v629_v7 = vsub.f32 %v2803_v32, %v3985_v60  ;;  %v2849_v52 = vsub.f32 %v2683_v25, %v2718_v45  ;;  %v2852_v29 = vand.u32 4294901760, %v2817_v3  ;;  %v2864_v47 = vand.u32 4294901760, %v2829_v2  ;;  %v2867_v25 = vld [vmem:[%s2544_s3 + $0x8] sm:$0xff] }
 0x13d   : > { %4221 = vst [vmem:[#allocation36_spill] sm:$0xff] %v2840_v15  ;;  %619 = vmatpush1.msra.mxu1 %v618_v62  ;;  %420 = vmatprep.subr.mxu0 %v2777_v16  ;;  %v624_v6 = vand.u32 4294901760, %v623_v27  ;;  %v2861_v60 = vsub.f32 %v2696_v30, %v2730_v12  ;;  %v4225_v62 = vand.u32 4294901760, %v2823_v22  ;;  %v2876_v34 = vsub.f32 %v2709_v35, %v2742_v53  ;;  %v2891_v27 = vld [vmem:[%s2544_s3] sm:$0xff] }
 0x13e   : > { %4222 = vst [vmem:[#allocation37_spill] sm:$0xff] %v2852_v29  ;;  %4224 = vst [vmem:[#allocation39_spill] sm:$0xff] %v2864_v47  ;;  %422 = vmatpush1.msra.mxu0 %v2799_v13  ;;  %v630_v45 = vand.u32 4294901760, %v629_v7  ;;  %v4227_v30 = vand.u32 4294901760, %v2837_v31  ;;  %v2884_v10 = vand.u32 4294901760, %v2855_v20  ;;  %v2899_v53 = vand.u32 4294901760, %v2867_v25 }
 0x13f   : > { %4223 = vst [vmem:[#allocation38_spill] sm:$0xff] %v2861_v60  ;;  %v635_v19 = vsub.f32 %v2823_v22, %v4225_v62  ;;  %4226 = vst [vmem:[#allocation40_spill] sm:$0xff] %v2876_v34  ;;  %625 = vmatprep.subr.mxu1 %v624_v6  ;;  %424 = vmatprep.subr.mxu0 %v2814_v8  ;;  %v2888_v62 = vsub.f32 %v2721_v46, %v2757_v54  ;;  %v4230_v6 = vand.u32 4294901760, %v2849_v52  ;;  %v2914_v7 = vld [vmem:[%s2544_s3 + $0x1f0] sm:$0xff] }
 0x140   : > { %v641_v12 = vsub.f32 %v2837_v31, %v4227_v30  ;;  %4228 = vst [vmem:[#allocation41_spill] sm:$0xff] %v2884_v10  ;;  %631 = vmatpush1.msra.mxu1 %v630_v45  ;;  %426 = vmatpush1.msra.mxu0 %v2826_v24  ;;  %4231 = vst [vmem:[#allocation43_spill] sm:$0xff] %v2899_v53  ;;  %v4232_v45 = vand.u32 4294901760, %v2861_v60  ;;  %v2921_v57 = vand.u32 4294901760, %v2891_v27 }
 0x141   : > { %4229 = vst [vmem:[#allocation42_spill] sm:$0xff] %v2888_v62  ;;  %v636_v35 = vand.u32 4294901760, %v635_v19  ;;  %v647_v30 = vsub.f32 %v2849_v52, %v4230_v6  ;;  %428 = vmatprep.subr.mxu0 %v2840_v15  ;;  %v2911_v6 = vsub.f32 %v2745_v21, %v2777_v16  ;;  %v2928_v21 = vld [vmem:[%s2544_s3 + $0x1e8] sm:$0xff]  ;;  %v2936_v16 = vand.u32 4294901760, %v2902_v5 }
 0x142   : > { %v642_v46 = vand.u32 4294901760, %v641_v12  ;;  %v653_v19 = vsub.f32 %v2861_v60, %v4232_v45  ;;  %430 = vmatpush1.msra.mxu0 %v2852_v29  ;;  %v4234_v12 = vand.u32 4294901760, %v2876_v34  ;;  %4235 = vst [vmem:[#allocation45_spill] sm:$0xff] %v2921_v57  ;;  %v2925_v45 = vsub.f32 %v2769_v59, %v2799_v13 }
 0x143   : > { %4233 = vst [vmem:[#allocation44_spill] sm:$0xff] %v2911_v6  ;;  %637 = vmatprep.subr.mxu1 %v636_v35  ;;  %v648_v1 = vand.u32 4294901760, %v647_v30  ;;  %432 = vmatprep.subr.mxu0 %v2864_v47  ;;  %v4237_v35 = vand.u32 4294901760, %v2888_v62  ;;  %4238 = vst [vmem:[#allocation47_spill] sm:$0xff] %v2936_v16 }
 0x144   : > { %v659_v63 = vsub.f32 %v2876_v34, %v4234_v12  ;;  %4236 = vst [vmem:[#allocation46_spill] sm:$0xff] %v2925_v45  ;;  %643 = vmatpush1.msra.mxu1 %v642_v46  ;;  %v654_v54 = vand.u32 4294901760, %v653_v19  ;;  %v2939_v34 = vld [vmem:[%s2544_s3 + $0x1e0] sm:$0xff]  ;;  %434 = vmatpush1.msra.mxu0 %v2884_v10  ;;  %v2945_v19 = vsub.f32 %v2780_v40, %v2814_v8  ;;  %v2951_v12 = vld [vmem:[%s2544_s3 + $0x1d8] sm:$0xff]  ;;  %v2962_v40 = vand.u32 4294901760, %v2928_v21 }
 0x145   : > { %v665_v30 = vsub.f32 %v2888_v62, %v4237_v35  ;;  %649 = vmatprep.subr.mxu1 %v648_v1  ;;  %v2948_v35 = vand.u32 4294901760, %v2914_v7  ;;  %436 = vmatprep.subr.mxu0 %v2899_v53  ;;  %v2959_v46 = vsub.f32 %v2792_v18, %v2826_v24  ;;  %v2977_v18 = vld [vmem:[%s2544_s3 + $0x1d0] sm:$0xff]  ;;  %v2986_v8 = vand.u32 4294901760, %v2951_v12 }
 0x146   : > { %v660_v59 = vand.u32 4294901760, %v659_v63  ;;  %4239 = vst [vmem:[#allocation48_spill] sm:$0xff] %v2945_v19  ;;  %655 = vmatpush1.msra.mxu1 %v654_v54  ;;  %v4241_v63 = vand.u32 4294901760, %v2911_v6  ;;  %4243 = vst [vmem:[#allocation51_spill] sm:$0xff] %v2962_v40  ;;  %438 = vmatpush1.msra.mxu0 %v2921_v57  ;;  %v4244_v54 = vand.u32 4294901760, %v2925_v45 }
 0x147   : > { %4240 = vst [vmem:[#allocation49_spill] sm:$0xff] %v2948_v35  ;;  %v666_v13 = vand.u32 4294901760, %v665_v30  ;;  %4242 = vst [vmem:[#allocation50_spill] sm:$0xff] %v2959_v46  ;;  %440 = vmatprep.subr.mxu0 %v2936_v16 }
 0x148   : > { %v671_v1 = vsub.f32 %v2911_v6, %v4241_v63  ;;  %661 = vmatprep.subr.mxu1 %v660_v59  ;;  %v677_v30 = vsub.f32 %v2925_v45, %v4244_v54  ;;  %v2971_v63 = vsub.f32 %v2806_v61, %v2840_v15  ;;  %v2974_v6 = vand.u32 4294901760, %v2939_v34  ;;  %4248 = vst [vmem:[#allocation55_spill] sm:$0xff] %v2986_v8  ;;  %v2989_v61 = vld [vmem:[%s2544_s3 + $0x1c8] sm:$0xff] }
 0x149   : > { %667 = vmatpush1.msra.mxu1 %v666_v13  ;;  %v2983_v54 = vsub.f32 %v2817_v3, %v2852_v29  ;;  %v4249_v45 = vand.u32 4294901760, %v2945_v19  ;;  %442 = vmatpush2.msra.mxu0 %v2948_v35  ;;  %v2998_v59 = vsub.f32 %v2829_v2, %v2864_v47  ;;  %v4251_v3 = vand.u32 4294901760, %v2959_v46 }
 0x14a   : > { %4245 = vst [vmem:[#allocation52_spill] sm:$0xff] %v2971_v63  ;;  %4246 = vst [vmem:[#allocation53_spill] sm:$0xff] %v2974_v6  ;;  %v672_v24 = vand.u32 4294901760, %v671_v1  ;;  %v678_v15 = vand.u32 4294901760, %v677_v30  ;;  %444 = vmatprep.subr.mxu0 %v2962_v40  ;;  %v3010_v1 = vsub.f32 %v2855_v20, %v2884_v10  ;;  %v3021_v47 = vand.u32 4294901760, %v2989_v61  ;;  %v3036_v30 = vld [vmem:[%s2544_s3 + $0x1b0] sm:$0xff] }
 0x14b   : > { %4247 = vst [vmem:[#allocation54_spill] sm:$0xff] %v2983_v54  ;;  %v683_v13 = vsub.f32 %v2945_v19, %v4249_v45  ;;  %4250 = vst [vmem:[#allocation56_spill] sm:$0xff] %v2998_v59  ;;  %v689_v29 = vsub.f32 %v2959_v46, %v4251_v3  ;;  %v3006_v45 = vand.u32 4294901760, %v2977_v18  ;;  %v3013_v19 = vld [vmem:[%s2544_s3 + $0x1c0] sm:$0xff]  ;;  %446 = vmatpush2.msra.mxu0 %v2974_v6  ;;  %v3024_v46 = vld [vmem:[%s2544_s3 + $0x1b8] sm:$0xff]  ;;  %v4256_v10 = vand.u32 4294901760, %v2983_v54 }
 0x14c   : > { %673 = vmatprep.subr.mxu1 %v672_v24  ;;  %4253 = vst [vmem:[#allocation58_spill] sm:$0xff] %v3010_v1  ;;  %v4254_v24 = vand.u32 4294901760, %v2971_v63  ;;  %4255 = vst [vmem:[#allocation59_spill] sm:$0xff] %v3021_v47  ;;  %448 = vmatprep.subr.mxu0 %v2986_v8  ;;  %v4258_v62 = vand.u32 4294901760, %v2998_v59 }
 0x14d   : > { %4252 = vst [vmem:[#allocation57_spill] sm:$0xff] %v3006_v45  ;;  %679 = vmatpush1.msra.mxu1 %v678_v15  ;;  %v684_v2 = vand.u32 4294901760, %v683_v13  ;;  %v690_v20 = vand.u32 4294901760, %v689_v29  ;;  %v701_v15 = vsub.f32 %v2983_v54, %v4256_v10  ;;  %450 = vmatpush2.msra.mxu0 %v3006_v45  ;;  %v3043_v10 = vand.u32 4294901760, %v3013_v19  ;;  %v3061_v54 = vld [vmem:[%s2544_s3 + $0x1a0] sm:$0xff] }
 0x14e   : > { %v695_v3 = vsub.f32 %v2971_v63, %v4254_v24  ;;  %v3033_v24 = vsub.f32 %v2867_v25, %v2899_v53  ;;  %v707_v29 = vsub.f32 %v2998_v59, %v4258_v62  ;;  %v3047_v13 = vsub.f32 %v2891_v27, %v2921_v57  ;;  %v3050_v25 = vld [vmem:[%s2544_s3 + $0x1a8] sm:$0xff]  ;;  %452 = vmatprep.subr.mxu0 %v3021_v47  ;;  %v3073_v62 = vld [vmem:[%s2544_s3 + $0x198] sm:$0xff] }
 0x14f   : > { %685 = vmatprep.subr.mxu1 %v684_v2  ;;  %4259 = vst [vmem:[#allocation61_spill] sm:$0xff] %v3043_v10  ;;  %v702_v53 = vand.u32 4294901760, %v701_v15  ;;  %v4261_v2 = vand.u32 4294901760, %v3010_v1  ;;  %v3058_v59 = vand.u32 4294901760, %v3024_v46  ;;  %454 = vmatpush2.msra.mxu0 %v3043_v10  ;;  %v3067_v15 = vsub.f32 %v2902_v5, %v2936_v16 }
 0x150   : > { %4257 = vst [vmem:[#allocation60_spill] sm:$0xff] %v3033_v24  ;;  %v696_v63 = vand.u32 4294901760, %v695_v3  ;;  %4260 = vst [vmem:[#allocation62_spill] sm:$0xff] %v3047_v13  ;;  %691 = vmatpush1.msra.mxu1 %v690_v20  ;;  %v708_v27 = vand.u32 4294901760, %v707_v29  ;;  %v4050_v20 = vand.u32 4294901760, %v3047_v13  ;;  %v3081_v29 = vsub.f32 %v2914_v7, %v2948_v35  ;;  %v3099_v7 = vld [vmem:[%s2544_s3 + $0x190] sm:$0xff] }
 0x151   : > { %v713_v3 = vsub.f32 %v3010_v1, %v4261_v2  ;;  %4262 = vst [vmem:[#allocation63_spill] sm:$0xff] %v3058_v59  ;;  %4263 = vst [vmem:[#allocation64_spill] sm:$0xff] %v3067_v15  ;;  %v3070_v2 = vand.u32 4294901760, %v3036_v30  ;;  %v4265_v1 = vand.u32 4294901760, %v3033_v24  ;;  %456 = vmatprep.subr.mxu0 %v3058_v59  ;;  %v3084_v5 = vand.u32 4294901760, %v3050_v25 }
 0x152   : > { %697 = vmatprep.subr.mxu1 %v696_v63  ;;  %4266 = vst [vmem:[#allocation66_spill] sm:$0xff] %v3081_v29  ;;  %v3096_v16 = vand.u32 4294901760, %v3061_v54 }
 0x153   : > { %4264 = vst [vmem:[#allocation65_spill] sm:$0xff] %v3070_v2  ;;  %703 = vmatpush1.msra.mxu1 %v702_v53  ;;  %v714_v57 = vand.u32 4294901760, %v713_v3  ;;  %v719_v63 = vsub.f32 %v3033_v24, %v4265_v1  ;;  %4267 = vst [vmem:[#allocation67_spill] sm:$0xff] %v3084_v5  ;;  %v725_v53 = vsub.f32 %v3047_v13, %v4050_v20  ;;  %458 = vmatpush2.msra.mxu0 %v3070_v2 }
 0x154   : > { %709 = vmatprep.subr.mxu1 %v708_v27  ;;  %v3093_v1 = vsub.f32 %v2928_v21, %v2962_v40  ;;  %4269 = vst [vmem:[#allocation69_spill] sm:$0xff] %v3096_v16  ;;  %460 = vmatprep.subr.mxu0 %v3084_v5  ;;  %v3105_v20 = vsub.f32 %v2939_v34, %v2974_v6  ;;  %v3108_v3 = vand.u32 4294901760, %v3073_v62  ;;  %v3111_v21 = vld [vmem:[%s2544_s3 + $0x188] sm:$0xff]  ;;  %v4272_v13 = vand.u32 4294901760, %v3067_v15 }
 0x155   : > { %715 = vmatpush1.msra.mxu1 %v714_v57  ;;  %v720_v35 = vand.u32 4294901760, %v719_v63  ;;  %v726_v40 = vand.u32 4294901760, %v725_v53  ;;  %462 = vmatpush2.msra.mxu0 %v3096_v16  ;;  %v3120_v27 = vsub.f32 %v2951_v12, %v2986_v8  ;;  %v4274_v34 = vand.u32 4294901760, %v3081_v29 }
 0x156   : > { %4268 = vst [vmem:[#allocation68_spill] sm:$0xff] %v3093_v1  ;;  %4270 = vst [vmem:[#allocation70_spill] sm:$0xff] %v3105_v20  ;;  %v731_v57 = vsub.f32 %v3067_v15, %v4272_v13  ;;  %464 = vmatprep.subr.mxu0 %v3108_v3  ;;  %v3128_v13 = vand.u32 4294901760, %v3099_v7  ;;  %v3132_v63 = vsub.f32 %v2977_v18, %v3006_v45  ;;  %v3135_v15 = vld [vmem:[%s2544_s3 + $0x180] sm:$0xff]  ;;  %v3142_v8 = vand.u32 4294901760, %v3111_v21 }
 0x157   : > { %4271 = vst [vmem:[#allocation71_spill] sm:$0xff] %v3108_v3  ;;  %4273 = vst [vmem:[#allocation72_spill] sm:$0xff] %v3120_v27  ;;  %721 = vmatprep.subr.mxu1 %v720_v35  ;;  %v737_v6 = vsub.f32 %v3081_v29, %v4274_v34  ;;  %v4277_v35 = vand.u32 4294901760, %v3093_v1  ;;  %v3145_v29 = vld [vmem:[%s2544_s3 + $0x178] sm:$0xff]  ;;  %v4279_v18 = vand.u32 4294901760, %v3105_v20 }
 0x158   : > { %4275 = vst [vmem:[#allocation73_spill] sm:$0xff] %v3128_v13  ;;  %4276 = vst [vmem:[#allocation74_spill] sm:$0xff] %v3132_v63  ;;  %727 = vmatpush1.msra.mxu1 %v726_v40  ;;  %v732_v12 = vand.u32 4294901760, %v731_v57  ;;  %466 = vmatpush2.msra.mxu0 %v3128_v13  ;;  %v3154_v57 = vsub.f32 %v2989_v61, %v3021_v47  ;;  %v3168_v40 = vsub.f32 %v3013_v19, %v3043_v10  ;;  %v3171_v61 = vld [vmem:[%s2544_s3 + $0x168] sm:$0xff] }
 0x159   : > { %v743_v34 = vsub.f32 %v3093_v1, %v4277_v35  ;;  %4278 = vst [vmem:[#allocation75_spill] sm:$0xff] %v3142_v8  ;;  %v738_v24 = vand.u32 4294901760, %v737_v6  ;;  %v749_v45 = vsub.f32 %v3105_v20, %v4279_v18  ;;  %v3157_v35 = vld [vmem:[%s2544_s3 + $0x170] sm:$0xff]  ;;  %v4281_v1 = vand.u32 4294901760, %v3120_v27  ;;  %468 = vmatprep.subr.mxu0 %v3142_v8  ;;  %v3181_v20 = vld [vmem:[%s2544_s3 + $0x160] sm:$0xff] }
 0x15a   : > { %4280 = vst [vmem:[#allocation76_spill] sm:$0xff] %v3154_v57  ;;  %733 = vmatprep.subr.mxu1 %v732_v12  ;;  %v3164_v18 = vand.u32 4294901760, %v3135_v15  ;;  %4283 = vst [vmem:[#allocation78_spill] sm:$0xff] %v3168_v40  ;;  %v4284_v12 = vand.u32 4294901760, %v3132_v63  ;;  %v4083_v19 = vand.u32 4294901760, %v3168_v40  ;;  %v4288_v10 = vand.u32 4294901760, %v3154_v57 }
 0x15b   : > { %v744_v53 = vand.u32 4294901760, %v743_v34  ;;  %v755_v6 = vsub.f32 %v3120_v27, %v4281_v1  ;;  %739 = vmatpush2.msra.mxu1 %v738_v24  ;;  %v750_v47 = vand.u32 4294901760, %v749_v45  ;;  %v3178_v27 = vand.u32 4294901760, %v3145_v29 }
 0x15c   : > { %4282 = vst [vmem:[#allocation77_spill] sm:$0xff] %v3164_v18  ;;  %v761_v34 = vsub.f32 %v3132_v63, %v4284_v12  ;;  %470 = vmatpush2.msra.mxu0 %v3164_v18  ;;  %v3187_v45 = vsub.f32 %v3024_v46, %v3058_v59  ;;  %v3190_v24 = vand.u32 4294901760, %v3157_v35  ;;  %v3193_v12 = vld [vmem:[%s2544_s3 + $0x158] sm:$0xff]  ;;  %v3204_v46 = vand.u32 4294901760, %v3171_v61 }
 0x15d   : > { %4285 = vst [vmem:[#allocation79_spill] sm:$0xff] %v3178_v27  ;;  %745 = vmatprep.subr.mxu1 %v744_v53  ;;  %v756_v60 = vand.u32 4294901760, %v755_v6  ;;  %v767_v53 = vsub.f32 %v3154_v57, %v4288_v10  ;;  %472 = vmatprep.subr.mxu0 %v3178_v27  ;;  %v3201_v6 = vsub.f32 %v3036_v30, %v3070_v2  ;;  %v3216_v59 = vand.u32 4294901760, %v3181_v20  ;;  %v3219_v30 = vld [vmem:[%s2544_s3 + $0x150] sm:$0xff] }
 0x15e   : > { %4286 = vst [vmem:[#allocation80_spill] sm:$0xff] %v3187_v45  ;;  %4287 = vst [vmem:[#allocation81_spill] sm:$0xff] %v3190_v24  ;;  %751 = vmatpush2.msra.mxu1 %v750_v47  ;;  %v762_v1 = vand.u32 4294901760, %v761_v34  ;;  %v773_v47 = vsub.f32 %v3168_v40, %v4083_v19  ;;  %474 = vmatpush2.msra.mxu0 %v3190_v24  ;;  %v3213_v10 = vsub.f32 %v3050_v25, %v3084_v5  ;;  %v3231_v25 = vld [vmem:[%s2544_s3 + $0x148] sm:$0xff] }
 0x15f   : > { %4289 = vst [vmem:[#allocation82_spill] sm:$0xff] %v3201_v6  ;;  %4290 = vst [vmem:[#allocation83_spill] sm:$0xff] %v3204_v46  ;;  %757 = vmatprep.subr.mxu1 %v756_v60  ;;  %v768_v2 = vand.u32 4294901760, %v767_v53  ;;  %476 = vmatprep.subr.mxu0 %v3204_v46  ;;  %v3225_v19 = vsub.f32 %v3061_v54, %v3096_v16  ;;  %v3228_v34 = vand.u32 4294901760, %v3193_v12  ;;  %v4295_v40 = vand.u32 4294901760, %v3187_v45 }
 0x160   : > { %4291 = vst [vmem:[#allocation84_spill] sm:$0xff] %v3213_v10  ;;  %4292 = vst [vmem:[#allocation85_spill] sm:$0xff] %v3216_v59  ;;  %763 = vmatpush2.msra.mxu1 %v762_v1  ;;  %v774_v5 = vand.u32 4294901760, %v773_v47  ;;  %478 = vmatpush2.msra.mxu0 %v3216_v59  ;;  %v3240_v60 = vsub.f32 %v3073_v62, %v3108_v3  ;;  %v4297_v54 = vand.u32 4294901760, %v3201_v6  ;;  %v3262_v3 = vand.u32 4294901760, %v3231_v25 }
 0x161   : > { %4293 = vst [vmem:[#allocation86_spill] sm:$0xff] %v3225_v19  ;;  %4294 = vst [vmem:[#allocation87_spill] sm:$0xff] %v3228_v34  ;;  %v779_v1 = vsub.f32 %v3187_v45, %v4295_v40  ;;  %769 = vmatprep.subr.mxu1 %v768_v2  ;;  %480 = vmatprep.subr.mxu0 %v3228_v34  ;;  %v3248_v40 = vand.u32 4294901760, %v3219_v30  ;;  %v3252_v53 = vsub.f32 %v3099_v7, %v3128_v13  ;;  %v3255_v45 = vld [vmem:[%s2544_s3 + $0x140] sm:$0xff] }
 0x162   : > { %4296 = vst [vmem:[#allocation88_spill] sm:$0xff] %v3240_v60  ;;  %v785_v16 = vsub.f32 %v3201_v6, %v4297_v54  ;;  %775 = vmatpush2.msra.mxu1 %v774_v5  ;;  %v4300_v2 = vand.u32 4294901760, %v3213_v10  ;;  %4301 = vst [vmem:[#allocation91_spill] sm:$0xff] %v3262_v3  ;;  %v3265_v6 = vld [vmem:[%s2544_s3 + $0x138] sm:$0xff]  ;;  %v4302_v7 = vand.u32 4294901760, %v3225_v19  ;;  %v3288_v5 = vsub.f32 %v3135_v15, %v3164_v18 }
 0x163   : > { %4298 = vst [vmem:[#allocation89_spill] sm:$0xff] %v3248_v40  ;;  %4299 = vst [vmem:[#allocation90_spill] sm:$0xff] %v3252_v53  ;;  %v780_v62 = vand.u32 4294901760, %v779_v1  ;;  %482 = vmatpush2.msra.mxu0 %v3248_v40  ;;  %v3274_v1 = vsub.f32 %v3111_v21, %v3142_v8  ;;  %v3291_v21 = vld [vmem:[%s2544_s3 + $0x128] sm:$0xff] }
 0x164   : > { %v791_v54 = vsub.f32 %v3213_v10, %v4300_v2  ;;  %v786_v57 = vand.u32 4294901760, %v785_v16  ;;  %v797_v13 = vsub.f32 %v3225_v19, %v4302_v7  ;;  %v3277_v2 = vld [vmem:[%s2544_s3 + $0x130] sm:$0xff]  ;;  %v4304_v10 = vand.u32 4294901760, %v3240_v60  ;;  %484 = vmatprep.subr.mxu0 %v3262_v3  ;;  %4306 = vst [vmem:[#allocation94_spill] sm:$0xff] %v3288_v5  ;;  %v3301_v19 = vld [vmem:[%s2544_s3 + $0x120] sm:$0xff] }
 0x165   : > { %4303 = vst [vmem:[#allocation92_spill] sm:$0xff] %v3274_v1  ;;  %781 = vmatprep.subr.mxu1 %v780_v62  ;;  %v3284_v7 = vand.u32 4294901760, %v3255_v45  ;;  %v4307_v62 = vand.u32 4294901760, %v3252_v53  ;;  %v4116_v15 = vand.u32 4294901760, %v3288_v5  ;;  %v4310_v18 = vand.u32 4294901760, %v3274_v1 }
 0x166   : > { %v792_v47 = vand.u32 4294901760, %v791_v54  ;;  %v803_v16 = vsub.f32 %v3240_v60, %v4304_v10  ;;  %787 = vmatpush2.msra.mxu1 %v786_v57  ;;  %v798_v8 = vand.u32 4294901760, %v797_v13  ;;  %v3298_v60 = vand.u32 4294901760, %v3265_v6 }
 0x167   : > { %4305 = vst [vmem:[#allocation93_spill] sm:$0xff] %v3284_v7  ;;  %v809_v54 = vsub.f32 %v3252_v53, %v4307_v62  ;;  %486 = vmatpush2.msra.mxu0 %v3284_v7  ;;  %v3307_v13 = vsub.f32 %v3145_v29, %v3178_v27  ;;  %v3310_v57 = vand.u32 4294901760, %v3277_v2  ;;  %v3313_v62 = vld [vmem:[%s2544_s3 + $0x118] sm:$0xff]  ;;  %v3324_v29 = vand.u32 4294901760, %v3291_v21 }
 0x168   : > { %4308 = vst [vmem:[#allocation95_spill] sm:$0xff] %v3298_v60  ;;  %793 = vmatprep.subr.mxu1 %v792_v47  ;;  %v804_v63 = vand.u32 4294901760, %v803_v16  ;;  %v815_v47 = vsub.f32 %v3274_v1, %v4310_v18  ;;  %488 = vmatprep.subr.mxu0 %v3298_v60  ;;  %v3321_v16 = vsub.f32 %v3157_v35, %v3190_v24  ;;  %v3336_v27 = vand.u32 4294901760, %v3301_v19  ;;  %v3339_v35 = vld [vmem:[%s2544_s3 + $0x110] sm:$0xff] }
 0x169   : > { %4309 = vst [vmem:[#allocation96_spill] sm:$0xff] %v3307_v13  ;;  %799 = vmatpush2.msra.mxu1 %v798_v8  ;;  %v810_v10 = vand.u32 4294901760, %v809_v54  ;;  %4312 = vst [vmem:[#allocation98_spill] sm:$0xff] %v3324_v29  ;;  %v821_v8 = vsub.f32 %v3288_v5, %v4116_v15  ;;  %490 = vmatpush2.msra.mxu0 %v3310_v57  ;;  %v3333_v18 = vsub.f32 %v3171_v61, %v3204_v46  ;;  %v3351_v61 = vld [vmem:[%s2544_s3 + $0x108] sm:$0xff] }
 0x16a   : > { %4311 = vst [vmem:[#allocation97_spill] sm:$0xff] %v3321_v16  ;;  %805 = vmatprep.subr.mxu1 %v804_v63  ;;  %4314 = vst [vmem:[#allocation100_spill] sm:$0xff] %v3336_v27  ;;  %v816_v24 = vand.u32 4294901760, %v815_v47  ;;  %492 = vmatprep.subr.mxu0 %v3324_v29  ;;  %v3345_v15 = vsub.f32 %v3181_v20, %v3216_v59  ;;  %v3348_v54 = vand.u32 4294901760, %v3313_v62  ;;  %v4317_v5 = vand.u32 4294901760, %v3307_v13  ;;  %v3375_v47 = vld [vmem:[%s2544_s3 + $0x100] sm:$0xff] }
 0x16b   : > { %4313 = vst [vmem:[#allocation99_spill] sm:$0xff] %v3333_v18  ;;  %811 = vmatpush2.msra.mxu1 %v810_v10  ;;  %v822_v46 = vand.u32 4294901760, %v821_v8  ;;  %494 = vmatpush2.msra.mxu0 %v3336_v27  ;;  %v3360_v63 = vsub.f32 %v3193_v12, %v3228_v34  ;;  %v4319_v20 = vand.u32 4294901760, %v3321_v16  ;;  %v3368_v8 = vand.u32 4294901760, %v3339_v35  ;;  %s2122_s3 = scalar_lea.vmem %s3870_s27, 512 }
 0x16c   : > { %4315 = vst [vmem:[#allocation101_spill] sm:$0xff] %v3345_v15  ;;  %4316 = vst [vmem:[#allocation102_spill] sm:$0xff] %v3348_v54  ;;  %v827_v10 = vsub.f32 %v3307_v13, %v4317_v5  ;;  %817 = vmatprep.subr.mxu1 %v816_v24  ;;  %496 = vmatprep.subr.mxu0 %v3348_v54  ;;  %v3372_v5 = vsub.f32 %v3219_v30, %v3248_v40  ;;  %v4321_v24 = vand.u32 4294901760, %v3333_v18  ;;  %p2123_p2 = scmp.ne.s32.totalorder %s3870_s27, %s2122_s3  ;;  %p2130_p10 = scmp.lt.s32.totalorder %s2128_s18, %s2122_s3 }
 0x16d   : > { %4318 = vst [vmem:[#allocation103_spill] sm:$0xff] %v3360_v63  ;;  %v833_v59 = vsub.f32 %v3321_v16, %v4319_v20  ;;  %823 = vmatpush2.msra.mxu1 %v822_v46  ;;  %v3382_v1 = vand.u32 4294901760, %v3351_v61  ;;  %v308_v16 = vld [vmem:[#allocation2] sm:$0xff]  ;;  %v4322_v53 = vand.u32 4294901760, %v3345_v15  ;;  %498 = vmatpush2.msra.mxu0 %v3368_v8  ;;  %v4323_v40 = vand.u32 4294901760, %v3360_v63 }
 0x16e   : > { %4320 = vst [vmem:[#allocation104_spill] sm:$0xff] %v3372_v5  ;;  %v828_v12 = vand.u32 4294901760, %v827_v10  ;;  %v839_v34 = vsub.f32 %v3333_v18, %v4321_v24  ;;  %v3391_v10 = vsub.f32 %v3231_v25, %v3262_v3  ;;  %v307_v24 = vld [vmem:[#allocation2 + $0x10] sm:$0xff]  ;;  %v4325_v25 = vand.u32 4294901760, %v3372_v5  ;;  %p2124_p8 = pnand %p2123_p2, %p4561_p9  ;;  %p2131_p6 = por %p2130_p10, %p2129_p13 }
 0x16f   : > { %v834_v13 = vand.u32 4294901760, %v833_v59  ;;  %v845_v30 = vsub.f32 %v3345_v15, %v4322_v53  ;;  %v851_v18 = vsub.f32 %v3360_v63, %v4323_v40  ;;  %500 = vmatprep.subr.mxu0 %v3382_v1  ;;  %v3398_v59 = vand.u32 4294901760, %v3375_v47 }
 0x170   : > { %829 = vmatprep.subr.mxu1 %v828_v12  ;;  %v840_v20 = vand.u32 4294901760, %v839_v34  ;;  %v3402_v53 = vsub.f32 %v3255_v45, %v3284_v7  ;;  %v857_v12 = vsub.f32 %v3372_v5, %v4325_v25  ;;  %v4144_v34 = vand.u32 4294901760, %v3391_v10  ;;  %p2125_p1 = pneg %p2124_p8 }
 0x171   : > { %835 = vmatpush2.msra.mxu1 %v834_v13  ;;  %v846_v46 = vand.u32 4294901760, %v845_v30  ;;  %v3408_v3 = vand.u32 4294901760, %v308_v16  ;;  %v852_v40 = vand.u32 4294901760, %v851_v18  ;;  %502 = vmatpush2.msra.mxu0 %v3398_v59  ;;  %v3414_v45 = vsub.f32 %v3265_v6, %v3298_v60 }
 0x172   : > { %4324 = vst [vmem:[#allocation105_spill] sm:$0xff] %v3402_v53  ;;  %841 = vmatprep.subr.mxu1 %v840_v20  ;;  %v4143_v63 = vand.u32 4294901760, %v3402_v53  ;;  %v3416_v13 = vand.u32 4294901760, %v307_v24  ;;  %v858_v30 = vand.u32 4294901760, %v857_v12  ;;  %v863_v25 = vsub.f32 %v3391_v10, %v4144_v34  ;;  %939 = vmatprep.subr.mxu0 %v2585_v51  ;;  %p2132_p3 = pnand %p2131_p6, %p2125_p1 }
 0x173   : > { %4326 = vst [vmem:[#allocation106_spill] sm:$0xff] %v3408_v3  ;;  %847 = vmatpush2.msra.mxu1 %v846_v46  ;;  %v3422_v7 = vsub.f32 %v308_v16, %v3408_v3  ;;  %v3427_v18 = vsub.f32 %v3277_v2, %v3310_v57  ;;  %v4147_v20 = vand.u32 4294901760, %v3414_v45  ;;  %v3438_v16 = vsub.f32 %v3291_v21, %v3324_v29 }
 0x174   : > { %4327 = vst [vmem:[#allocation107_spill] sm:$0xff] %v3416_v13  ;;  %853 = vmatprep.subr.mxu1 %v852_v40  ;;  %v869_v6 = vsub.f32 %v3402_v53, %v4143_v63  ;;  %v3434_v46 = vsub.f32 %v307_v24, %v3416_v13  ;;  %921 = vmatprep.mubr.f32.mxu1 %v3408_v3  ;;  %v864_v12 = vand.u32 4294901760, %v863_v25 }
 0x175   : > { %4328 = vst [vmem:[#allocation108_spill] sm:$0xff] %v3427_v18  ;;  %859 = vmatpush2.msra.mxu1 %v858_v30  ;;  %v4148_v2 = vand.u32 4294901760, %v3422_v7  ;;  %v4151_v40 = vand.u32 4294901760, %v3427_v18  ;;  %v3445_v63 = vsub.f32 %v3301_v19, %v3336_v27  ;;  %v875_v24 = vsub.f32 %v3414_v45, %v4147_v20 }
 0x176   : > { %v870_v34 = vand.u32 4294901760, %v869_v6  ;;  %v4156_v21 = vand.u32 4294901760, %v3434_v46  ;;  %v4157_v29 = vand.u32 4294901760, %v3438_v16  ;;  %865 = vmatprep.subr.mxu1 %v864_v12  ;;  %v3461_v6 = vsub.f32 %v3313_v62, %v3348_v54 }
 0x177   : > { %v506_v30 = vsub.f32 %v3422_v7, %v4148_v2  ;;  %v881_v25 = vsub.f32 %v3427_v18, %v4151_v40  ;;  %v876_v20 = vand.u32 4294901760, %v875_v24  ;;  %v3471_v3 = vsub.f32 %v3339_v35, %v3368_v8 }
 0x178   : > { %871 = vmatpush2.msra.mxu1 %v870_v34  ;;  %v512_v12 = vsub.f32 %v3434_v46, %v4156_v21  ;;  %v887_v2 = vsub.f32 %v3438_v16, %v4157_v29  ;;  %v4329_v27 = vand.u32 4294901760, %v3445_v63  ;;  %v4161_v34 = vand.u32 4294901760, %v3461_v6 }
 0x179   : > { %v507_v40 = vand.u32 4294901760, %v506_v30  ;;  %v882_v19 = vand.u32 4294901760, %v881_v25  ;;  %877 = vmatprep.subr.mxu1 %v876_v20  ;;  %v4160_v21 = vand.u32 4294901760, %v3471_v3  ;;  %v3480_v29 = vsub.f32 %v3351_v61, %v3382_v1 }
 0x17a   : > { %v893_v62 = vsub.f32 %v3445_v63, %v4329_v27  ;;  %v513_v24 = vand.u32 4294901760, %v512_v12  ;;  %v888_v54 = vand.u32 4294901760, %v887_v2  ;;  %v899_v30 = vsub.f32 %v3461_v6, %v4161_v34  ;;  %v4346_v34 = vld [vmem:[#allocation27_spill] sm:$0xff] }
 0x17b   : > { %4330 = vst [vmem:[#allocation109_spill] sm:$0xff] %v3480_v29  ;;  %508 = vmatprep.mubr.f32.mxu0 %v507_v40  ;;  %883 = vmatpush2.msra.mxu1 %v882_v19  ;;  %v3487_v27 = vsub.f32 %v3375_v47, %v3398_v59  ;;  %v905_v20 = vsub.f32 %v3471_v3, %v4160_v21  ;;  %v4159_v61 = vand.u32 4294901760, %v3480_v29  ;;  %v4345_v21 = vld [vmem:[#allocation50_spill] sm:$0xff] }
 0x17c   : > { %v894_v35 = vand.u32 4294901760, %v893_v62  ;;  %514 = vmatmul.mubr.f32.vlgmr.msra.gmra.mxu0 %v513_v24  ;;  %889 = vmatprep.subr.mxu1 %v888_v54  ;;  %v900_v2 = vand.u32 4294901760, %v899_v30  ;;  %v4332_v62 = vld [vmem:[#allocation20_spill] sm:$0xff]  ;;  %v4333_v24 = vld [vmem:[#allocation38_spill] sm:$0xff] }
 0x17d   : > { %4331 = vst [vmem:[#allocation110_spill] sm:$0xff] %v3487_v27  ;;  %942 = vmatpush1.msra.mxu0 %v2601_v56  ;;  %v4158_v40 = vand.u32 4294901760, %v3487_v27  ;;  %v906_v25 = vand.u32 4294901760, %v905_v20  ;;  %v911_v47 = vsub.f32 %v3480_v29, %v4159_v61  ;;  %v4335_v30 = vld [vmem:[#allocation40_spill] sm:$0xff]  ;;  %v4336_v20 = vld [vmem:[#allocation22_spill] sm:$0xff] }
 0x17e   : > { %895 = vmatpush2.msra.mxu1 %v894_v35  ;;  %945 = vmatprep.subr.mxu0 %v2607_v58  ;;  %v4334_v35 = vld [vmem:[#allocation21_spill] sm:$0xff]  ;;  %v4344_v61 = vld [vmem:[#allocation26_spill] sm:$0xff] }
 0x17f   : > { %948 = vmatpush1.msra.mxu0 %v2624_v0  ;;  %901 = vmatprep.subr.mxu1 %v900_v2  ;;  %v917_v54 = vsub.f32 %v3487_v27, %v4158_v40  ;;  %v912_v19 = vand.u32 4294901760, %v911_v47  ;;  %v4337_v2 = vld [vmem:[#allocation42_spill] sm:$0xff]  ;;  %v4339_v47 = vld [vmem:[#allocation44_spill] sm:$0xff] }
 0x180   : > { %951 = vmatprep.subr.mxu0 %v2633_v4  ;;  %907 = vmatpush2.msra.mxu1 %v906_v25  ;;  %v4338_v25 = vld [vmem:[#allocation23_spill] sm:$0xff]  ;;  %v4343_v40 = vld [vmem:[#allocation48_spill] sm:$0xff] }
 0x181   : > { %954 = vmatpush1.msra.mxu0 %v2647_v9  ;;  %v918_v12 = vand.u32 4294901760, %v917_v54  ;;  %913 = vmatprep.subr.mxu1 %v912_v19  ;;  %v4340_v54 = vld [vmem:[#allocation24_spill] sm:$0xff]  ;;  %v4341_v19 = vld [vmem:[#allocation46_spill] sm:$0xff] }
 0x182   : > { %957 = vmatprep.subr.mxu0 %v2661_v14 }
 0x183   : > { %919 = vmatpush2.msra.mxu1 %v918_v12  ;;  %960 = vmatpush1.msra.mxu0 %v2690_v28  ;;  %v4342_v12 = vld [vmem:[#allocation25_spill] sm:$0xff] }
 0x184   : > { %923 = vmatmul.mubr.f32.vlgmr.msra.gmra.mxu1 %v3416_v13  ;;  %963 = vmatprep.subr.mxu0 %v2703_v33  ;;  %v4347_v13 = vld [vmem:[#allocation52_spill] sm:$0xff] }
 0x185   : > { %1151 = vmatprep.subr.mxu1 %v2559_v36  ;;  %966 = vmatpush1.msra.mxu0 %v2715_v41 }
 0x186   : > { %1153 = vmatpush1.msra.mxu1 %v2561_v37  ;;  %969 = vmatprep.subr.mxu0 %v2727_v11 }
 0x187   : > { %1155 = vmatprep.subr.mxu1 %v2563_v38  ;;  %972 = vmatpush1.msra.mxu0 %v2739_v17 }
 0x188   : > { %1157 = vmatpush1.msra.mxu1 %v2568_v42  ;;  %975 = vmatprep.subr.mxu0 %v2754_v26 }
 0x189   : > { %1159 = vmatprep.subr.mxu1 %v2570_v43  ;;  %978 = vmatpush1.msra.mxu0 %v2766_v39 }
 0x18a   : > { %1161 = vmatpush1.msra.mxu1 %v2572_v44  ;;  %981 = vmatprep.subr.mxu0 %v2789_v23 }
 0x18b   : > { %1163 = vmatprep.subr.mxu1 %v2578_v48  ;;  %984 = vmatpush1.msra.mxu0 %v2803_v32 }
 0x18c   : > { %1165 = vmatpush1.msra.mxu1 %v2580_v49  ;;  %987 = vmatprep.subr.mxu0 %v2823_v22 }
 0x18d   : > { %1167 = vmatprep.subr.mxu1 %v2582_v50  ;;  %990 = vmatpush1.msra.mxu0 %v2837_v31 }
 0x18e   : > { %1169 = vmatpush1.msra.mxu1 %v2598_v55  ;;  %993 = vmatprep.subr.mxu0 %v2849_v52 }
 0x18f   : > { %1171 = vmatprep.subr.mxu1 %v4332_v62  ;;  %996 = vmatpush1.msra.mxu0 %v4333_v24  ;;  %v4395_v24 = vld [vmem:[#allocation65_spill] sm:$0xff] }
 0x190   : > { %1173 = vmatpush1.msra.mxu1 %v4334_v35  ;;  %999 = vmatprep.subr.mxu0 %v4335_v30  ;;  %v4381_v30 = vld [vmem:[#allocation51_spill] sm:$0xff] }
 0x191   : > { %1175 = vmatprep.subr.mxu1 %v4336_v20  ;;  %1002 = vmatpush1.msra.mxu0 %v4337_v2  ;;  %v4348_v2 = vld [vmem:[#allocation28_spill] sm:$0xff]  ;;  %v4372_v20 = vld [vmem:[#allocation43_spill] sm:$0xff] }
 0x192   : > { %1177 = vmatpush1.msra.mxu1 %v4338_v25  ;;  %1005 = vmatprep.subr.mxu0 %v4339_v47  ;;  %v4349_v25 = vld [vmem:[#allocation54_spill] sm:$0xff]  ;;  %v4350_v47 = vld [vmem:[#allocation29_spill] sm:$0xff] }
 0x193   : > { %1179 = vmatprep.subr.mxu1 %v4340_v54  ;;  %1008 = vmatpush1.msra.mxu0 %v4341_v19  ;;  %v4351_v54 = vld [vmem:[#allocation56_spill] sm:$0xff]  ;;  %v4352_v19 = vld [vmem:[#allocation30_spill] sm:$0xff] }
 0x194   : > { %1181 = vmatpush1.msra.mxu1 %v4342_v12  ;;  %1011 = vmatprep.subr.mxu0 %v4343_v40  ;;  %v4353_v12 = vld [vmem:[#allocation58_spill] sm:$0xff]  ;;  %v4354_v40 = vld [vmem:[#allocation31_spill] sm:$0xff] }
 0x195   : > { %1183 = vmatprep.subr.mxu1 %v4344_v61  ;;  %1014 = vmatpush1.msra.mxu0 %v4345_v21  ;;  %v4355_v61 = vld [vmem:[#allocation60_spill] sm:$0xff] }
 0x196   : > { %1185 = vmatpush1.msra.mxu1 %v4346_v34  ;;  %1017 = vmatprep.subr.mxu0 %v4347_v13  ;;  %v4356_v21 = vld [vmem:[#allocation32_spill] sm:$0xff]  ;;  %v4357_v34 = vld [vmem:[#allocation62_spill] sm:$0xff]  ;;  %v4358_v13 = vld [vmem:[#allocation33_spill] sm:$0xff] }
 0x197   : > { %1187 = vmatprep.subr.mxu1 %v4348_v2  ;;  %1020 = vmatpush1.msra.mxu0 %v4349_v25  ;;  %v4359_v2 = vld [vmem:[#allocation64_spill] sm:$0xff]  ;;  %v4360_v25 = vld [vmem:[#allocation34_spill] sm:$0xff] }
 0x198   : > { %1189 = vmatpush1.msra.mxu1 %v4350_v47  ;;  %1023 = vmatprep.subr.mxu0 %v4351_v54  ;;  %v4361_v47 = vld [vmem:[#allocation66_spill] sm:$0xff]  ;;  %v4362_v54 = vld [vmem:[#allocation35_spill] sm:$0xff] }
 0x199   : > { %1191 = vmatprep.subr.mxu1 %v4352_v19  ;;  %1026 = vmatpush1.msra.mxu0 %v4353_v12  ;;  %v4363_v19 = vld [vmem:[#allocation68_spill] sm:$0xff] }
 0x19a   : > { %1193 = vmatpush1.msra.mxu1 %v4354_v40  ;;  %1029 = vmatprep.subr.mxu0 %v4355_v61  ;;  %v4364_v12 = vld [vmem:[#allocation36_spill] sm:$0xff]  ;;  %v4365_v40 = vld [vmem:[#allocation70_spill] sm:$0xff]  ;;  %v4366_v61 = vld [vmem:[#allocation37_spill] sm:$0xff] }
 0x19b   : > { %1195 = vmatprep.subr.mxu1 %v4356_v21  ;;  %1032 = vmatpush1.msra.mxu0 %v4357_v34  ;;  %v4367_v21 = vld [vmem:[#allocation72_spill] sm:$0xff] }
 0x19c   : > { %1197 = vmatpush1.msra.mxu1 %v4358_v13  ;;  %1035 = vmatprep.subr.mxu0 %v4359_v2  ;;  %v310_v34 = vld [vmem:[#allocation2 + $0x8] sm:$0xff]  ;;  %v4368_v13 = vld [vmem:[#allocation39_spill] sm:$0xff]  ;;  %v4369_v2 = vld [vmem:[#allocation74_spill] sm:$0xff] }
 0x19d   : > { %1199 = vmatprep.subr.mxu1 %v4360_v25  ;;  %1038 = vmatpush2.msra.mxu0 %v4361_v47  ;;  %v4370_v25 = vld [vmem:[#allocation41_spill] sm:$0xff]  ;;  %v4371_v47 = vld [vmem:[#allocation76_spill] sm:$0xff] }
 0x19e   : > { %1201 = vmatpush1.msra.mxu1 %v4362_v54  ;;  %1041 = vmatprep.subr.mxu0 %v4363_v19  ;;  %v309_v54 = vld [vmem:[#allocation2 + $0x18] sm:$0xff] }
 0x19f   : > { %1203 = vmatprep.subr.mxu1 %v4364_v12  ;;  %1044 = vmatpush2.msra.mxu0 %v4365_v40  ;;  %v4373_v19 = vld [vmem:[#allocation78_spill] sm:$0xff]  ;;  %v3571_v12 = vand.u32 4294901760, %v310_v34  ;;  %v4375_v40 = vld [vmem:[#allocation45_spill] sm:$0xff] }
 0x1a0   : > { %1205 = vmatpush1.msra.mxu1 %v4366_v61  ;;  %1047 = vmatprep.subr.mxu0 %v4367_v21  ;;  %v4376_v61 = vld [vmem:[#allocation80_spill] sm:$0xff]  ;;  %v4377_v21 = vld [vmem:[#allocation47_spill] sm:$0xff] }
 0x1a1   : > { %1207 = vmatprep.subr.mxu1 %v4368_v13  ;;  %1050 = vmatpush2.msra.mxu0 %v4369_v2  ;;  %4374 = vst [vmem:[#allocation20_spill] sm:$0xff] %v3571_v12  ;;  %v4378_v13 = vld [vmem:[#allocation82_spill] sm:$0xff]  ;;  %v3577_v2 = vand.u32 4294901760, %v309_v54 }
 0x1a2   : > { %1209 = vmatpush1.msra.mxu1 %v4370_v25  ;;  %1053 = vmatprep.subr.mxu0 %v4371_v47  ;;  %v4379_v25 = vld [vmem:[#allocation49_spill] sm:$0xff]  ;;  %v4380_v47 = vld [vmem:[#allocation84_spill] sm:$0xff] }
 0x1a3   : > { %1211 = vmatprep.subr.mxu1 %v4372_v20  ;;  %1056 = vmatpush2.msra.mxu0 %v4373_v19  ;;  %v4382_v20 = vld [vmem:[#allocation86_spill] sm:$0xff]  ;;  %v3584_v19 = vsub.f32 %v310_v34, %v3571_v12  ;;  %v3591_v35 = vsub.f32 %v309_v54, %v3577_v2 }
 0x1a4   : > { %1213 = vmatpush1.msra.mxu1 %v4375_v40  ;;  %1059 = vmatprep.subr.mxu0 %v4376_v61  ;;  %v4383_v40 = vld [vmem:[#allocation53_spill] sm:$0xff]  ;;  %v4384_v61 = vld [vmem:[#allocation88_spill] sm:$0xff] }
 0x1a5   : > { %1215 = vmatprep.subr.mxu1 %v4377_v21  ;;  %1062 = vmatpush2.msra.mxu0 %v4378_v13  ;;  %v4385_v21 = vld [vmem:[#allocation55_spill] sm:$0xff]  ;;  %v4386_v13 = vld [vmem:[#allocation90_spill] sm:$0xff]  ;;  %v4165_v34 = vand.u32 4294901760, %v3584_v19  ;;  %v4167_v54 = vand.u32 4294901760, %v3591_v35 }
 0x1a6   : > { %1217 = vmatpush2.msra.mxu1 %v4379_v25  ;;  %1065 = vmatprep.subr.mxu0 %v4380_v47  ;;  %v4387_v25 = vld [vmem:[#allocation57_spill] sm:$0xff]  ;;  %v4388_v47 = vld [vmem:[#allocation92_spill] sm:$0xff] }
 0x1a7   : > { %1219 = vmatprep.subr.mxu1 %v4381_v30  ;;  %1068 = vmatpush2.msra.mxu0 %v4382_v20  ;;  %v4389_v30 = vld [vmem:[#allocation59_spill] sm:$0xff]  ;;  %v4390_v20 = vld [vmem:[#allocation94_spill] sm:$0xff] }
 0x1a8   : > { %1221 = vmatpush2.msra.mxu1 %v4383_v40  ;;  %1071 = vmatprep.subr.mxu0 %v4384_v61  ;;  %v4391_v40 = vld [vmem:[#allocation61_spill] sm:$0xff]  ;;  %v4392_v61 = vld [vmem:[#allocation96_spill] sm:$0xff] }
 0x1a9   : > { %1223 = vmatprep.subr.mxu1 %v4385_v21  ;;  %1074 = vmatpush2.msra.mxu0 %v4386_v13  ;;  %v4393_v21 = vld [vmem:[#allocation63_spill] sm:$0xff]  ;;  %v4394_v13 = vld [vmem:[#allocation97_spill] sm:$0xff] }
 0x1aa   : > { %1225 = vmatpush2.msra.mxu1 %v4387_v25  ;;  %1077 = vmatprep.subr.mxu0 %v4388_v47  ;;  %v4396_v25 = vld [vmem:[#allocation99_spill] sm:$0xff] }
 0x1ab   : > { %1227 = vmatprep.subr.mxu1 %v4389_v30  ;;  %1080 = vmatpush2.msra.mxu0 %v4390_v20  ;;  %v4397_v47 = vld [vmem:[#allocation67_spill] sm:$0xff]  ;;  %v4398_v20 = vld [vmem:[#allocation69_spill] sm:$0xff] }
 0x1ac   : > { %1229 = vmatpush2.msra.mxu1 %v4391_v40  ;;  %1083 = vmatprep.subr.mxu0 %v4392_v61  ;;  %v522_v40 = vsub.f32 %v3584_v19, %v4165_v34  ;;  %v4399_v61 = vld [vmem:[#allocation103_spill] sm:$0xff] }
 0x1ad   : > { %1231 = vmatprep.subr.mxu1 %v4393_v21  ;;  %1086 = vmatpush2.msra.mxu0 %v4394_v13  ;;  %v4400_v21 = vld [vmem:[#allocation71_spill] sm:$0xff] }
 0x1ae   : > { %1233 = vmatpush2.msra.mxu1 %v4395_v24  ;;  %1089 = vmatprep.subr.mxu0 %v4396_v25  ;;  %v528_v25 = vsub.f32 %v3591_v35, %v4167_v54  ;;  %v4401_v24 = vld [vmem:[#allocation73_spill] sm:$0xff]  ;;  %v523_v34 = vand.u32 4294901760, %v522_v40  ;;  %v4406_v54 = vld [vmem:[#allocation83_spill] sm:$0xff] }
 0x1af   : > { %1235 = vmatprep.subr.mxu1 %v4397_v47  ;;  %1092 = vmatpush2.msra.mxu0 %v3345_v15  ;;  %v4402_v15 = vld [vmem:[#allocation75_spill] sm:$0xff] }
 0x1b0   : > { %1237 = vmatpush2.msra.mxu1 %v4398_v20  ;;  %1095 = vmatprep.subr.mxu0 %v4399_v61  ;;  %v4403_v20 = vld [vmem:[#allocation77_spill] sm:$0xff]  ;;  %v4408_v40 = vld [vmem:[#allocation87_spill] sm:$0xff] }
 0x1b1   : > { %1239 = vmatprep.subr.mxu1 %v4400_v21  ;;  %1098 = vmatpush2.msra.mxu0 %v3372_v5  ;;  %v4404_v21 = vld [vmem:[#allocation79_spill] sm:$0xff]  ;;  %v529_v5 = vand.u32 4294901760, %v528_v25  ;;  %v4405_v61 = vld [vmem:[#allocation81_spill] sm:$0xff] }
 0x1b2   : > { %1241 = vmatpush2.msra.mxu1 %v4401_v24  ;;  %1101 = vmatprep.subr.mxu0 %v3391_v10  ;;  %v4410_v25 = vld [vmem:[#allocation91_spill] sm:$0xff] }
 0x1b3   : > { %1243 = vmatprep.subr.mxu1 %v4402_v15  ;;  %1104 = vmatpush2.msra.mxu0 %v3402_v53  ;;  %v4407_v53 = vld [vmem:[#allocation85_spill] sm:$0xff] }
 0x1b4   : > { %1245 = vmatpush2.msra.mxu1 %v4403_v20  ;;  %1107 = vmatprep.subr.mxu0 %v3414_v45 }
 0x1b5   : > { %1247 = vmatprep.subr.mxu1 %v4404_v21  ;;  %1110 = vmatpush2.msra.mxu0 %v3427_v18  ;;  %v4409_v18 = vld [vmem:[#allocation89_spill] sm:$0xff] }
 0x1b6   : > { %1249 = vmatpush2.msra.mxu1 %v4405_v61  ;;  %1113 = vmatprep.subr.mxu0 %v3438_v16 }
 0x1b7   : > { %1251 = vmatprep.subr.mxu1 %v4406_v54  ;;  %524 = vmatprep.mubr.f32.mxu0 %v523_v34  ;;  %v4411_v34 = vld [vmem:[#allocation93_spill] sm:$0xff] }
 0x1b8   : > { %1116 = vmatpush2.msra.mxu0 %v3445_v63  ;;  %1253 = vmatpush2.msra.mxu1 %v4407_v53 }
 0x1b9   : > { %530 = vmatmul.mubr.f32.gmra.mxu0 %v529_v5  ;;  %1119 = vmatprep.subr.mxu0 %v3461_v6  ;;  %v4412_v5 = vand.u32 4294901760, %v2585_v51  ;;  %v4418_v51 = vld [vmem:[#allocation102_spill] sm:$0xff] }
 0x1ba   : > { %1255 = vmatprep.subr.mxu1 %v4408_v40  ;;  %1122 = vmatpush2.msra.mxu0 %v3471_v3 }
 0x1bb   : > { %1257 = vmatpush2.msra.mxu1 %v4409_v18  ;;  %1125 = vmatprep.subr.mxu0 %v3480_v29  ;;  %v4413_v29 = vand.u32 4294901760, %v2601_v56  ;;  %v4419_v56 = vand.u32 4294901760, %v2633_v4  ;;  %v4424_v4 = vand.u32 4294901760, %v3434_v46 }
 0x1bc   : > { %1259 = vmatprep.subr.mxu1 %v4410_v25  ;;  %1128 = vmatpush2.msra.mxu0 %v3487_v27  ;;  %v4414_v27 = vand.u32 4294901760, %v2607_v58  ;;  %v4420_v58 = vand.u32 4294901760, %v2647_v9  ;;  %v4426_v9 = vand.u32 4294901760, %v2715_v41  ;;  %v4435_v41 = vand.u32 4294901760, %v2823_v22  ;;  %v4449_v22 = vld [vmem:[#allocation24_spill] sm:$0xff] }
 0x1bd   : > { %1131 = vmatprep.mubr.f32.mxu0 %v3422_v7  ;;  %1261 = vmatpush2.msra.mxu1 %v4411_v34  ;;  %v4415_v34 = vld [vmem:[#allocation98_spill] sm:$0xff] }
 0x1be   : > { %929 = vmatprep.mubr.f32.mxu1 %v3571_v12  ;;  %1134 = vmatmul.mubr.f32.vlgmr.msra.gmra.mxu0 %v3434_v46  ;;  %v4416_v12 = vld [vmem:[#allocation100_spill] sm:$0xff] }
 0x1bf   : > { %1263 = vmatprep.subr.mxu1 %v3298_v60  ;;  %1306 = vmatprep.subr.mxu0 %v4412_v5  ;;  %v4417_v60 = vand.u32 4294901760, %v2624_v0  ;;  %v4422_v0 = vand.u32 4294901760, %v3422_v7  ;;  %v4429_v7 = vand.u32 4294901760, %v2739_v17  ;;  %v4440_v17 = vld [vmem:[#allocation21_spill] sm:$0xff]  ;;  %v4455_v5 = vld [vmem:[#allocation26_spill] sm:$0xff] }
 0x1c0   : > { %931 = vmatmul.mubr.f32.gmra.mxu1 %v3577_v2  ;;  %1310 = vmatpush1.msra.mxu0 %v4413_v29  ;;  %v4421_v29 = vand.u32 4294901760, %v2661_v14  ;;  %v4427_v14 = vand.u32 4294901760, %v2727_v11 }
 0x1c1   : > { %1265 = vmatpush2.msra.mxu1 %v3310_v57  ;;  %1314 = vmatprep.subr.mxu0 %v4414_v27  ;;  %v4425_v27 = vand.u32 4294901760, %v2703_v33  ;;  %v4431_v33 = vand.u32 4294901760, %v2754_v26  ;;  %v4443_v26 = vld [vmem:[#allocation22_spill] sm:$0xff] }
 0x1c2   : > { %1267 = vmatprep.subr.mxu1 %v4415_v34  ;;  %1141 = vmatprep.mubr.f32.mxu0 %v3584_v19 }
 0x1c3   : > { %1269 = vmatpush2.msra.mxu1 %v4416_v12  ;;  %1318 = vmatpush1.msra.mxu0 %v4417_v60  ;;  %v4423_v60 = vand.u32 4294901760, %v2690_v28  ;;  %v4428_v28 = vand.u32 4294901760, %v3584_v19 }
 0x1c4   : > { %1144 = vmatmul.mubr.f32.gmra.mxu0 %v3591_v35  ;;  %1271 = vmatprep.subr.mxu1 %v4418_v51 }
 0x1c5   : > { %1322 = vmatprep.subr.mxu0 %v4419_v56  ;;  %1273 = vmatpush2.msra.mxu1 %v3368_v8  ;;  %v4456_v56 = vld [vmem:[#allocation50_spill] sm:$0xff] }
 0x1c6   : > { %1326 = vmatpush1.msra.mxu0 %v4420_v58  ;;  %1275 = vmatprep.subr.mxu1 %v3382_v1  ;;  %v4457_v58 = vand.u32 4294901760, %v4456_v56 }
 0x1c7   : > { %1330 = vmatprep.subr.mxu0 %v4421_v29  ;;  %1277 = vmatpush2.msra.mxu1 %v3398_v59  ;;  %v4458_v29 = vld [vmem:[#allocation27_spill] sm:$0xff] }
 0x1c8   : > { %1281 = vmatprep.mubr.f32.mxu1 %v4422_v0  ;;  %1334 = vmatpush1.msra.mxu0 %v4423_v60  ;;  %v4459_v0 = vld [vmem:[#allocation52_spill] sm:$0xff] }
 0x1c9   : > { %1285 = vmatmul.mubr.f32.vlgmr.msra.gmra.mxu1 %v4424_v4  ;;  %1338 = vmatprep.subr.mxu0 %v4425_v27  ;;  %v4460_v60 = vand.u32 4294901760, %v4459_v0  ;;  %v4461_v4 = vld [vmem:[#allocation28_spill] sm:$0xff]  ;;  %v4462_v27 = vld [vmem:[#allocation54_spill] sm:$0xff] }
 0x1ca   : > { %1577 = vmatprep.subr.mxu1 %v2559_v36  ;;  %1342 = vmatpush1.msra.mxu0 %v4426_v9  ;;  %v4430_v36 = vand.u32 4294901760, %v3591_v35  ;;  %v4453_v35 = vld [vmem:[#allocation48_spill] sm:$0xff]  ;;  %v4463_v9 = vand.u32 4294901760, %v4462_v27 }
 0x1cb   : > { %1579 = vmatpush1.msra.mxu1 %v2561_v37  ;;  %1346 = vmatprep.subr.mxu0 %v4427_v14  ;;  %v4432_v37 = vand.u32 4294901760, %v2766_v39  ;;  %v4446_v39 = vld [vmem:[#allocation23_spill] sm:$0xff]  ;;  %v4454_v19 = vand.u32 4294901760, %v4453_v35  ;;  %v4464_v14 = vld [vmem:[#allocation29_spill] sm:$0xff] }
 0x1cc   : > { %1581 = vmatprep.subr.mxu1 %v2563_v38  ;;  %1293 = vmatprep.mubr.f32.mxu1 %v4428_v28  ;;  %v4433_v38 = vand.u32 4294901760, %v2789_v23  ;;  %v4465_v28 = vld [vmem:[#allocation56_spill] sm:$0xff] }
 0x1cd   : > { %1350 = vmatpush1.msra.mxu0 %v4429_v7  ;;  %1583 = vmatpush1.msra.mxu1 %v2568_v42  ;;  %v4434_v42 = vand.u32 4294901760, %v2803_v32  ;;  %v4466_v7 = vand.u32 4294901760, %v4465_v28 }
 0x1ce   : > { %1297 = vmatmul.mubr.f32.gmra.mxu1 %v4430_v36  ;;  %1354 = vmatprep.subr.mxu0 %v4431_v33  ;;  %v4467_v36 = vld [vmem:[#allocation30_spill] sm:$0xff] }
 0x1cf   : > { %1585 = vmatprep.subr.mxu1 %v2570_v43  ;;  %1358 = vmatpush1.msra.mxu0 %v4432_v37  ;;  %v4436_v43 = vand.u32 4294901760, %v2837_v31  ;;  %v4450_v31 = vld [vmem:[#allocation46_spill] sm:$0xff] }
 0x1d0   : > { %1587 = vmatpush1.msra.mxu1 %v2572_v44  ;;  %1362 = vmatprep.subr.mxu0 %v4433_v38  ;;  %v4437_v44 = vand.u32 4294901760, %v2849_v52  ;;  %v4451_v46 = vand.u32 4294901760, %v4450_v31  ;;  %v4468_v33 = vld [vmem:[#allocation58_spill] sm:$0xff]  ;;  %v4470_v38 = vld [vmem:[#allocation31_spill] sm:$0xff] }
 0x1d1   : > { %1589 = vmatprep.subr.mxu1 %v2578_v48  ;;  %1366 = vmatpush1.msra.mxu0 %v4434_v42  ;;  %v4438_v48 = vld [vmem:[#allocation38_spill] sm:$0xff]  ;;  %v4469_v37 = vand.u32 4294901760, %v4468_v33  ;;  %v4471_v42 = vld [vmem:[#allocation60_spill] sm:$0xff] }
 0x1d2   : > { %1591 = vmatpush1.msra.mxu1 %v2580_v49  ;;  %1370 = vmatprep.subr.mxu0 %v4435_v41  ;;  %v4439_v11 = vand.u32 4294901760, %v4438_v48  ;;  %v4441_v49 = vld [vmem:[#allocation40_spill] sm:$0xff]  ;;  %v4472_v41 = vand.u32 4294901760, %v4471_v42 }
 0x1d3   : > { %1593 = vmatprep.subr.mxu1 %v2582_v50  ;;  %1374 = vmatpush1.msra.mxu0 %v4436_v43  ;;  %v4442_v23 = vand.u32 4294901760, %v4441_v49  ;;  %v4444_v50 = vld [vmem:[#allocation42_spill] sm:$0xff]  ;;  %v4473_v43 = vld [vmem:[#allocation32_spill] sm:$0xff] }
 0x1d4   : > { %1595 = vmatpush1.msra.mxu1 %v2598_v55  ;;  %1378 = vmatprep.subr.mxu0 %v4437_v44  ;;  %v4445_v32 = vand.u32 4294901760, %v4444_v50  ;;  %v4447_v55 = vld [vmem:[#allocation44_spill] sm:$0xff]  ;;  %v4474_v44 = vld [vmem:[#allocation62_spill] sm:$0xff] }
 0x1d5   : > { %1597 = vmatprep.subr.mxu1 %v4332_v62  ;;  %1382 = vmatpush1.msra.mxu0 %v4439_v11  ;;  %v4448_v52 = vand.u32 4294901760, %v4447_v55  ;;  %v4452_v62 = vld [vmem:[#allocation25_spill] sm:$0xff]  ;;  %v4475_v48 = vand.u32 4294901760, %v4474_v44 }
 0x1d6   : > { %1599 = vmatpush1.msra.mxu1 %v4440_v17  ;;  %1386 = vmatprep.subr.mxu0 %v4442_v23  ;;  %v4476_v11 = vld [vmem:[#allocation33_spill] sm:$0xff]  ;;  %v4477_v17 = vld [vmem:[#allocation64_spill] sm:$0xff]  ;;  %v4479_v23 = vld [vmem:[#allocation34_spill] sm:$0xff] }
 0x1d7   : > { %1601 = vmatprep.subr.mxu1 %v4443_v26  ;;  %1390 = vmatpush1.msra.mxu0 %v4445_v32  ;;  %v4478_v49 = vand.u32 4294901760, %v4477_v17  ;;  %v4480_v26 = vld [vmem:[#allocation66_spill] sm:$0xff]  ;;  %v4482_v32 = vld [vmem:[#allocation35_spill] sm:$0xff] }
 0x1d8   : > { %1603 = vmatpush1.msra.mxu1 %v4446_v39  ;;  %1394 = vmatprep.subr.mxu0 %v4448_v52  ;;  %v4481_v50 = vand.u32 4294901760, %v4480_v26  ;;  %v4483_v39 = vld [vmem:[#allocation68_spill] sm:$0xff] }
 0x1d9   : > { %1605 = vmatprep.subr.mxu1 %v4449_v22  ;;  %1398 = vmatpush1.msra.mxu0 %v4451_v46  ;;  %v4484_v55 = vand.u32 4294901760, %v4483_v39  ;;  %v4485_v52 = vld [vmem:[#allocation36_spill] sm:$0xff]  ;;  %v4486_v22 = vld [vmem:[#allocation70_spill] sm:$0xff]  ;;  %v4488_v46 = vld [vmem:[#allocation37_spill] sm:$0xff] }
 0x1da   : > { %1607 = vmatpush1.msra.mxu1 %v4452_v62  ;;  %1402 = vmatprep.subr.mxu0 %v4454_v19  ;;  %v4487_v31 = vand.u32 4294901760, %v4486_v22  ;;  %v4489_v62 = vld [vmem:[#allocation72_spill] sm:$0xff]  ;;  %v4491_v19 = vld [vmem:[#allocation39_spill] sm:$0xff]  ;;  %v4523_v22 = vld [vmem:[#allocation61_spill] sm:$0xff] }
 0x1db   : > { %1609 = vmatprep.subr.mxu1 %v4455_v5  ;;  %1406 = vmatpush1.msra.mxu0 %v4457_v58  ;;  %v4490_v35 = vand.u32 4294901760, %v4489_v62  ;;  %v4492_v5 = vld [vmem:[#allocation74_spill] sm:$0xff]  ;;  %v4494_v58 = vld [vmem:[#allocation41_spill] sm:$0xff]  ;;  %v4526_v62 = vld [vmem:[#allocation63_spill] sm:$0xff] }
 0x1dc   : > { %1611 = vmatpush1.msra.mxu1 %v4458_v29  ;;  %1410 = vmatprep.subr.mxu0 %v4460_v60  ;;  %v4493_v56 = vand.u32 4294901760, %v4492_v5  ;;  %v4495_v29 = vld [vmem:[#allocation76_spill] sm:$0xff]  ;;  %v4497_v60 = vld [vmem:[#allocation43_spill] sm:$0xff] }
 0x1dd   : > { %1613 = vmatprep.subr.mxu1 %v4461_v4  ;;  %1414 = vmatpush1.msra.mxu0 %v4463_v9  ;;  %v4496_v0 = vand.u32 4294901760, %v4495_v29  ;;  %v4498_v4 = vld [vmem:[#allocation78_spill] sm:$0xff]  ;;  %v4500_v9 = vld [vmem:[#allocation45_spill] sm:$0xff]  ;;  %v4529_v5 = vld [vmem:[#allocation99_spill] sm:$0xff] }
 0x1de   : > { %1615 = vmatpush1.msra.mxu1 %v4464_v14  ;;  %1418 = vmatprep.subr.mxu0 %v4466_v7  ;;  %v4499_v27 = vand.u32 4294901760, %v4498_v4  ;;  %v4501_v14 = vld [vmem:[#allocation80_spill] sm:$0xff]  ;;  %v4503_v7 = vld [vmem:[#allocation47_spill] sm:$0xff]  ;;  %v4533_v29 = vld [vmem:[#allocation69_spill] sm:$0xff] }
 0x1df   : > { %1617 = vmatprep.subr.mxu1 %v4467_v36  ;;  %1422 = vmatpush1.msra.mxu0 %v4469_v37  ;;  %v4502_v28 = vand.u32 4294901760, %v4501_v14  ;;  %v4504_v36 = vld [vmem:[#allocation82_spill] sm:$0xff]  ;;  %v4506_v37 = vld [vmem:[#allocation49_spill] sm:$0xff]  ;;  %v4536_v4 = vld [vmem:[#allocation71_spill] sm:$0xff] }
 0x1e0   : > { %1619 = vmatpush1.msra.mxu1 %v4470_v38  ;;  %1426 = vmatprep.subr.mxu0 %v4472_v41  ;;  %v4505_v33 = vand.u32 4294901760, %v4504_v36  ;;  %v4507_v38 = vld [vmem:[#allocation84_spill] sm:$0xff]  ;;  %v4509_v41 = vld [vmem:[#allocation51_spill] sm:$0xff] }
 0x1e1   : > { %1621 = vmatprep.subr.mxu1 %v4473_v43  ;;  %1430 = vmatpush1.msra.mxu0 %v4475_v48  ;;  %v4508_v42 = vand.u32 4294901760, %v4507_v38  ;;  %v4510_v43 = vld [vmem:[#allocation86_spill] sm:$0xff]  ;;  %v4512_v48 = vld [vmem:[#allocation53_spill] sm:$0xff] }
 0x1e2   : > { %1623 = vmatpush1.msra.mxu1 %v4476_v11  ;;  %1434 = vmatprep.subr.mxu0 %v4478_v49  ;;  %v4511_v44 = vand.u32 4294901760, %v4510_v43  ;;  %v4513_v11 = vld [vmem:[#allocation88_spill] sm:$0xff]  ;;  %v4515_v49 = vld [vmem:[#allocation55_spill] sm:$0xff] }
 0x1e3   : > { %1625 = vmatprep.subr.mxu1 %v4479_v23  ;;  %1438 = vmatpush2.msra.mxu0 %v4481_v50  ;;  %v4514_v17 = vand.u32 4294901760, %v4513_v11  ;;  %v4516_v23 = vld [vmem:[#allocation90_spill] sm:$0xff]  ;;  %v4518_v50 = vld [vmem:[#allocation57_spill] sm:$0xff] }
 0x1e4   : > { %1627 = vmatpush1.msra.mxu1 %v4482_v32  ;;  %1442 = vmatprep.subr.mxu0 %v4484_v55  ;;  %v4517_v26 = vand.u32 4294901760, %v4516_v23  ;;  %v4519_v32 = vld [vmem:[#allocation92_spill] sm:$0xff]  ;;  %v4521_v55 = vld [vmem:[#allocation94_spill] sm:$0xff] }
 0x1e5   : > { %1629 = vmatprep.subr.mxu1 %v4485_v52  ;;  %1446 = vmatpush2.msra.mxu0 %v4487_v31  ;;  %v4520_v39 = vand.u32 4294901760, %v4519_v32  ;;  %v4522_v52 = vand.u32 4294901760, %v4521_v55  ;;  %v4524_v31 = vld [vmem:[#allocation96_spill] sm:$0xff] }
 0x1e6   : > { %1631 = vmatpush1.msra.mxu1 %v4488_v46  ;;  %1450 = vmatprep.subr.mxu0 %v4490_v35  ;;  %v4525_v46 = vand.u32 4294901760, %v4524_v31  ;;  %v4527_v35 = vand.u32 4294901760, %v4394_v13 }
 0x1e7   : > { %1633 = vmatprep.subr.mxu1 %v4491_v19  ;;  %1454 = vmatpush2.msra.mxu0 %v4493_v56  ;;  %v4528_v19 = vld [vmem:[#allocation65_spill] sm:$0xff]  ;;  %v4530_v56 = vand.u32 4294901760, %v4529_v5 }
 0x1e8   : > { %1635 = vmatpush1.msra.mxu1 %v4494_v58  ;;  %1458 = vmatprep.subr.mxu0 %v4496_v0  ;;  %v4534_v0 = vld [vmem:[#allocation103_spill] sm:$0xff] }
 0x1e9   : > { %1637 = vmatprep.subr.mxu1 %v4497_v60  ;;  %1462 = vmatpush2.msra.mxu0 %v4499_v27  ;;  %v4535_v60 = vand.u32 4294901760, %v4534_v0  ;;  %v4537_v27 = vld [vmem:[#allocation104_spill] sm:$0xff] }
 0x1ea   : > { %1639 = vmatpush1.msra.mxu1 %v4500_v9  ;;  %1466 = vmatprep.subr.mxu0 %v4502_v28  ;;  %v4538_v13 = vand.u32 4294901760, %v4537_v27  ;;  %v4539_v9 = vand.u32 4294901760, %v3391_v10  ;;  %v4542_v28 = vand.u32 4294901760, %v3414_v45  ;;  %v4545_v10 = vand.u32 4294901760, %v3438_v16 }
 0x1eb   : > { %1641 = vmatprep.subr.mxu1 %v4503_v7  ;;  %1470 = vmatpush2.msra.mxu0 %v4505_v33  ;;  %v4543_v7 = vld [vmem:[#allocation108_spill] sm:$0xff]  ;;  %v4547_v45 = vand.u32 4294901760, %v3461_v6  ;;  %v4555_v6 = vld [vmem:[#allocation107_spill] sm:$0xff] }
 0x1ec   : > { %1643 = vmatpush2.msra.mxu1 %v4506_v37  ;;  %1474 = vmatprep.subr.mxu0 %v4508_v42  ;;  %v4544_v36 = vand.u32 4294901760, %v4543_v7 }
 0x1ed   : > { %1645 = vmatprep.subr.mxu1 %v4509_v41  ;;  %1478 = vmatpush2.msra.mxu0 %v4511_v44 }
 0x1ee   : > { %1647 = vmatpush2.msra.mxu1 %v4512_v48  ;;  %1482 = vmatprep.subr.mxu0 %v4514_v17 }
 0x1ef   : > { %1649 = vmatprep.subr.mxu1 %v4515_v49  ;;  %1486 = vmatpush2.msra.mxu0 %v4517_v26 }
 0x1f0   : > { %1651 = vmatpush2.msra.mxu1 %v4518_v50  ;;  %1490 = vmatprep.subr.mxu0 %v4520_v39 }
 0x1f1   : > { %1653 = vmatprep.subr.mxu1 %v4389_v30  ;;  %1494 = vmatpush2.msra.mxu0 %v4522_v52  ;;  %v4531_v30 = vld [vmem:[#allocation101_spill] sm:$0xff] }
 0x1f2   : > { %1655 = vmatpush2.msra.mxu1 %v4523_v22  ;;  %1498 = vmatprep.subr.mxu0 %v4525_v46  ;;  %v4532_v58 = vand.u32 4294901760, %v4531_v30 }
 0x1f3   : > { %1657 = vmatprep.subr.mxu1 %v4526_v62  ;;  %1502 = vmatpush2.msra.mxu0 %v4527_v35 }
 0x1f4   : > { %1659 = vmatpush2.msra.mxu1 %v4528_v19  ;;  %1506 = vmatprep.subr.mxu0 %v4530_v56 }
 0x1f5   : > { %1661 = vmatprep.subr.mxu1 %v4397_v47  ;;  %1510 = vmatpush2.msra.mxu0 %v4532_v58  ;;  %v4540_v47 = vld [vmem:[#allocation105_spill] sm:$0xff] }
 0x1f6   : > { %1663 = vmatpush2.msra.mxu1 %v4533_v29  ;;  %1514 = vmatprep.subr.mxu0 %v4535_v60  ;;  %v4541_v14 = vand.u32 4294901760, %v4540_v47 }
 0x1f7   : > { %1665 = vmatprep.subr.mxu1 %v4536_v4  ;;  %1518 = vmatpush2.msra.mxu0 %v4538_v13 }
 0x1f8   : > { %1667 = vmatpush2.msra.mxu1 %v4401_v24  ;;  %1522 = vmatprep.subr.mxu0 %v4539_v9  ;;  %v4551_v24 = vld [vmem:[#allocation110_spill] sm:$0xff] }
 0x1f9   : > { %1669 = vmatprep.subr.mxu1 %v4402_v15  ;;  %1526 = vmatpush2.msra.mxu0 %v4541_v14  ;;  %v4546_v15 = vand.u32 4294901760, %v3445_v63  ;;  %v4552_v63 = vand.u32 4294901760, %v4551_v24 }
 0x1fa   : > { %1671 = vmatpush2.msra.mxu1 %v4403_v20  ;;  %1530 = vmatprep.subr.mxu0 %v4542_v28  ;;  %v4553_v20 = vld [vmem:[#allocation106_spill] sm:$0xff] }
 0x1fb   : > { %1673 = vmatprep.subr.mxu1 %v4404_v21  ;;  %1534 = vmatpush2.msra.mxu0 %v4544_v36  ;;  %v4548_v21 = vand.u32 4294901760, %v3471_v3  ;;  %v4557_v3 = vld [vmem:[#allocation20_spill] sm:$0xff] }
 0x1fc   : > { %1675 = vmatpush2.msra.mxu1 %v4405_v61  ;;  %1538 = vmatprep.subr.mxu0 %v4545_v10  ;;  %v4549_v61 = vld [vmem:[#allocation109_spill] sm:$0xff] }
 0x1fd   : > { %1677 = vmatprep.subr.mxu1 %v4406_v54  ;;  %1542 = vmatpush2.msra.mxu0 %v4546_v15  ;;  %v4550_v16 = vand.u32 4294901760, %v4549_v61  ;;  %v4556_v54 = vld [vmem:[#allocation95_spill] sm:$0xff] }
 0x1fe   : > { %1679 = vmatpush2.msra.mxu1 %v4407_v53  ;;  %1546 = vmatprep.subr.mxu0 %v4547_v45  ;;  %v4554_v53 = vld [vmem:[#allocation93_spill] sm:$0xff] }
 0x1ff   : > { %1681 = vmatprep.subr.mxu1 %v4408_v40  ;;  %1550 = vmatpush2.msra.mxu0 %v4548_v21 }
 0x200   : > { %1683 = vmatpush2.msra.mxu1 %v4409_v18  ;;  %1554 = vmatprep.subr.mxu0 %v4550_v16 }
 0x201   : > { %1685 = vmatprep.subr.mxu1 %v4410_v25  ;;  %1558 = vmatpush2.msra.mxu0 %v4552_v63 }
 0x202   : > { %1560 = vmatprep.mubr.f32.mxu0 %v4553_v20  ;;  %1687 = vmatpush2.msra.mxu1 %v4554_v53 }
 0x203   : > { %1562 = vmatmul.mubr.f32.vlgmr.msra.gmra.mxu0 %v4555_v6  ;;  %1689 = vmatprep.subr.mxu1 %v4556_v54 }
 0x204   : > { %1691 = vmatpush2.msra.mxu1 %v3310_v57  ;;  %1568 = vmatprep.mubr.f32.mxu0 %v4557_v3 }
 0x205   : > { %1693 = vmatprep.subr.mxu1 %v4415_v34  ;;  %1705 = vmatprep.mubr.f32.mxu1 %v4553_v20 }
 0x206   : > { %1695 = vmatpush2.msra.mxu1 %v4416_v12 }
 0x207   : > { %1570 = vmatmul.mubr.f32.gmra.mxu0 %v3577_v2  ;;  %1697 = vmatprep.subr.mxu1 %v4418_v51 }
 0x208   : > { %1699 = vmatpush2.msra.mxu1 %v3368_v8 }
 0x209   : > { %1701 = vmatprep.subr.mxu1 %v3382_v1 }
 0x20a   : > { %1703 = vmatpush2.msra.mxu1 %v3398_v59 }
 0x20b   : > { %1707 = vmatmul.mubr.f32.vlgmr.msra.gmra.mxu1 %v4555_v6 }
 0x20c   : > { %1713 = vmatprep.mubr.f32.mxu1 %v4557_v3 }
 0x20f   : > { %1715 = vmatmul.mubr.f32.gmra.mxu1 %v3577_v2 }
 0x23c   : > { %v515_v57 = vpop.f32.mrf.mxu0 }
 0x23e   : > { %v517_v18 = vpop.f32.mrf.mxu0 }
 0x244   : > { %v924_v12 = vpop.f32.mrf.mxu1 }
 0x245   : > { %v925_v43 = vadd.f32 %v924_v12, %v515_v57 }
 0x246   : > { %v926_v34 = vpop.f32.mrf.mxu1 }
 0x247   : > { %v927_v48 = vadd.f32 %v926_v34, %v517_v18 }
 0x279   : > { %v531_v40 = vpop.f32.mrf.mxu0 }
 0x27b   : > { %v533_v25 = vpop.f32.mrf.mxu0 }
 0x27e   : > { %v1135_v51 = vpop.f32.mrf.mxu0 }
 0x27f   : > { %v1136_v11 = vadd.f32 %v1135_v51, %v925_v43 }
 0x280   : > { %v932_v8 = vpop.f32.mrf.mxu1  ;;  %v1137_v33 = vpop.f32.mrf.mxu0 }
 0x281   : > { %v933_v17 = vadd.f32 %v932_v8, %v531_v40  ;;  %v1138_v49 = vadd.f32 %v1137_v33, %v927_v48 }
 0x282   : > { %v934_v1 = vpop.f32.mrf.mxu1 }
 0x283   : > { %v935_v23 = vadd.f32 %v934_v1, %v533_v25 }
 0x284   : > { %v1145_v37 = vpop.f32.mrf.mxu0 }
 0x285   : > { %v1146_v39 = vadd.f32 %v1145_v37, %v933_v17 }
 0x286   : > { %v1147_v38 = vpop.f32.mrf.mxu0 }
 0x287   : > { %v1148_v31 = vadd.f32 %v1147_v38, %v935_v23 }
 0x289   : > { %v1286_v59 = vpop.f32.mrf.mxu1 }
 0x28a   : > { %v1287_v26 = vadd.f32 %v1286_v59, %v1136_v11 }
 0x28b   : > { %v1288_v42 = vpop.f32.mrf.mxu1 }
 0x28c   : > { %v1289_v55 = vadd.f32 %v1288_v42, %v1138_v49 }
 0x28e   : > { %v1298_v44 = vpop.f32.mrf.mxu1 }
 0x28f   : > { %v1299_v46 = vadd.f32 %v1298_v44, %v1146_v39 }
 0x290   : > { %v1300_v50 = vpop.f32.mrf.mxu1 }
 0x291   : > { %v1301_v56 = vadd.f32 %v1300_v50, %v1148_v31 }
 0x2c3   : > { %v1563_v41 = vpop.f32.mrf.mxu0 }
 0x2c4   : > { %v1564_v52 = vadd.f32 %v1563_v41, %v1287_v26 }
 0x2c5   : > { %v1565_v2 = vpop.f32.mrf.mxu0 }
 0x2c6   : > { %v1566_v62 = vadd.f32 %v1565_v2, %v1289_v55 }
 0x2c7   : > { %v1571_v32 = vpop.f32.mrf.mxu0 }
 0x2c8   : > { %v1572_v30 = vadd.f32 %v1571_v32, %v1299_v46 }
 0x2c9   : > { %v1573_v19 = vpop.f32.mrf.mxu0 }
 0x2ca   : > { %v1574_v0 = vadd.f32 %v1573_v19, %v1301_v56 }
 0x2cb   : > { %v1708_v22 = vpop.f32.mrf.mxu1 }
 0x2cc   : > { %v1709_v35 = vadd.f32 %v1708_v22, %v1564_v52 }
 0x2cd   : > { %v1710_v5 = vpop.f32.mrf.mxu1 }
 0x2ce   : > { %1721 = vst [vmem:[%s2553_s8] sm:$0xff] %v1709_v35  ;;  %v1711_v58 = vadd.f32 %v1710_v5, %v1566_v62 }
 0x2cf   : > { %v1716_v29 = vpop.f32.mrf.mxu1 }
 0x2d0   : > { %1722 = vst [vmem:[%s2553_s8 + $0x8] sm:$0xff] %v1711_v58  ;;  %v1717_v60 = vadd.f32 %v1716_v29, %v1572_v30 }
 0x2d1   : > { %v1718_v4 = vpop.f32.mrf.mxu1 }
 0x2d2   : > { %1723 = vst [vmem:[%s2553_s8 + $0x10] sm:$0xff] %v1717_v60  ;;  %v1719_v27 = vadd.f32 %v1718_v4, %v1574_v0 }
 0x2d4   : > { %1724 = vst [vmem:[%s2553_s8 + $0x18] sm:$0xff] %v1719_v27 }
 0x2d5   : > { %2135 = shalt.err (!%p2132_p3)
}
 0x2d6   : > { %s2136_s1 = scalar_lea.hbm %s3868_s24, 512  ;;  %s2140_s22 = scalar_lea.hbm %s4560_s11, 2048 }
 0x2d7   : > { %p2137_p7 = scmp.ne.s32.totalorder %s3868_s24, %s2136_s1  ;;  %p2141_p4 = scmp.lt.s32.totalorder %s3868_s24, %s4560_s11 }
 0x2d8   : > { %p2142_p12 = scmp.lt.s32.totalorder %s2140_s22, %s2136_s1 }
 0x2d9   : > { %p2138_p11 = pnand %p2137_p7, %p4561_p9 }
 0x2da   : > { %p2143_p0 = por %p2142_p12, %p2141_p4 }
 0x2db   : > { %p2139_p5 = pneg %p2138_p11 }
 0x2dd   : > { %p2144_p2 = pnand %p2143_p0, %p2139_p5 }
 0x2df   : > { %2147 = shalt.err (!%p2144_p2)
}
 0x2e0   : > { %s2283_s4 = smov 256   ;;  %s2284_s0 = smov 512  }
 0x2e1   : > { %s2285_s29 = smov 16  }
 0x2e2   : > { %1896 = dma.vmem_to_hbm [thread:$0]  (%p4561_p9), %s3870_s27, 512, %s3868_s24, %s3876_s6, %s2283_s4, %s2284_s0, %s2285_s29  }
 0x2e3 PF: > { %p1916_p8 = scmp.ge.s32.totalorder %s2274_s25, 2  ;;  %s1757_s3 = sand.u32 1, %s2222_s12  }
 0x2e4   : > { %p4562_p1 = scmp.ne.s32.totalorder %s4192_s28, 0  ;;  %s1758_s21 = scalar_lea.sflag [#allocation5], %s1757_s3 }
 0x2e6   : > { %p1910_p13 = pnand %p1916_p8, %p4562_p1 }
 0x2e8   : > { %p1911_p10 = pneg %p1910_p13 }
 0x2ea   : > { %2217 = dma.done.wait (%p1911_p10), %s1758_s21, 512  }
 0x2eb   : > { %2219 = vsyncadd (%p1911_p10), %s1758_s21, 4294966784  ;;  %s20_s25 = sadd.s32 1, %s2274_s25   ;;  %s4564_s28 = sld [smem:[#allocation19_spill]] }
 0x2ec   : > { %p3904_p6 = scmp.ge.s32.totalorder %s20_s25, 6   ;;  %s4565_s22 = sld [smem:[#allocation16_spill]] }
 0x2ed   : > { %s4566_s27 = sld [smem:[#allocation17_spill]]  ;;  %s4568_s12 = smov %s2226_s13 }
 0x2ee   : > { %s4567_s24 = sld [smem:[#allocation18_spill]]  ;;  %s4569_s13 = smov %s2230_s14 }
 0x2ef   : > { %s4570_s14 = smov %s2475_s30  ;;  %s4571_s15 = smov %s2238_s16 }
 0x2f0   : > { %s4572_s16 = smov %s2242_s17  ;;  %s4573_s17 = smov %s2444_s9 }
 0x2f1   : > { %s4574_s18 = smov %s2250_s19  ;;  %s4575_s19 = smov %s2254_s20 }
 0x2f2   : > { %s4576_s20 = smov %s4564_s28  ;;  %s4577_s21 = smov %s2266_s23 }
 0x2f3   : > { %s4578_s23 = smov %s4566_s27  ;;  %19 = sbr.rel (!%p3904_p6) target bundleno = 15 (0xf), region = 96 }
 0x2f8   :  { %1763 = vsyncpa [#allocation4], 1 }
 0x2f9   :  { %1765 = vsyncpa [#allocation4 + $0x1], 1 }
 0x2fa   :  { %1766 = vsyncpa [#allocation7], 1 }
 0x2fb   :  { %1767 = vsyncpa [#allocation5], 1 }
 0x2fc   :  { %1769 = vsyncpa [#allocation5 + $0x1], 1 }

</bundles_post_ra>
